<compile_context>
chip_gen: v7x
topology: tpu7x:2x2x1
jax: 0.10.0
libtpu: 0.0.40
codegen_flags: <defaults>
</compile_context>

<pallas_src>
import jax
import jax.numpy as jnp
from jax import lax
from jax.experimental import pallas as pl
from jax.experimental.pallas import tpu as pltpu

# ----------------------- model hyper-parameters (small) -----------------------
DIM = 32          # token feature dim
CTX_DIM = 32      # context feature dim (default(context_dim, dim))
DEPTH = 2
HEADS = 2
DIM_HEAD = 16
INNER = HEADS * DIM_HEAD          # 32
MLP_DIM = 64
SCALE = DIM_HEAD ** (-0.5)
LN_EPS = 1e-5

B, N, M = 2, 8, 8                 # batch, query tokens, context tokens


def _pick_mxu_dtype():
    """bf16 MXU operands on bf16-native generations (v6e / v7x); f32 otherwise (v5e)."""
    try:
        kind = jax.devices()[0].device_kind.lower()
    except Exception:
        return jnp.float32
    if any(tag in kind for tag in ("v6", "v7", "trillium")):
        return jnp.bfloat16
    return jnp.float32


MXU_DTYPE = _pick_mxu_dtype()


# ------------------------------ kernel helpers --------------------------------
def _layernorm(v, g, b):
    # One-pass LN: mean and mean-of-squares are independent reductions.
    mu = jnp.mean(v, axis=-1, keepdims=True)
    ms = jnp.mean(v * v, axis=-1, keepdims=True)
    var = jnp.maximum(ms - mu * mu, 0.0)
    return (v - mu) * lax.rsqrt(var + LN_EPS) * g + b


def _gelu_exact(x):
    # PyTorch nn.GELU() default (erf-based, not tanh approximation)
    return 0.5 * x * (1.0 + lax.erf(x * (1.0 / jnp.sqrt(jnp.float32(2.0)))))


def _mm(a, b):
    # 2-D matmul on the MXU with f32 accumulation.
    return jnp.dot(a.astype(MXU_DTYPE), b.astype(MXU_DTYPE),
                   preferred_element_type=jnp.float32)


def _attend(q2, k2, v2, w_out):
    """Multi-head attention core for ONE batch element.

    q2: (nq, INNER) queries; k2/v2: (nk, INNER) keys/values; w_out: (INNER, DIM).
    Returns (nq, DIM). Heads are a static (HEADS=2) unroll of tiny 2-D MXU matmuls;
    the per-head outputs are concatenated once (head-major, identical to torch's
    rearrange 'b h n d -> b n (h d)') and projected by a single matmul.
    """
    head_outs = []
    for h in range(HEADS):                       # static -> unrolled
        sl = slice(h * DIM_HEAD, (h + 1) * DIM_HEAD)
        qh, kh, vh = q2[:, sl], k2[:, sl], v2[:, sl]
        # scores: contract the last axes directly (no explicit transpose)
        dots = lax.dot_general(qh.astype(MXU_DTYPE), kh.astype(MXU_DTYPE),
                               (((1,), (1,)), ((), ())),
                               preferred_element_type=jnp.float32) * SCALE
        dots = dots - jnp.max(dots, axis=-1, keepdims=True)
        e = jnp.exp(dots)
        p = e / jnp.sum(e, axis=-1, keepdims=True)        # exact softmax normalization
        head_outs.append(jnp.dot(p.astype(MXU_DTYPE), vh.astype(MXU_DTYPE),
                                 preferred_element_type=jnp.float32))
    merged = jnp.concatenate(head_outs, axis=-1)          # (nq, INNER)
    return _mm(merged, w_out)                             # ONE output projection


# Row layout of the packed per-layer (9, DIM) vector bundle.
_LN1_G, _LN1_B, _B_SA, _LN2_G, _LN2_B, _B_CA, _LN3_G, _LN3_B, _B_FF2 = range(9)


# --------------------------------- kernel ------------------------------------
def fused_kernel(x_ref, ctx_ref, vecs_ref, bff1_ref,
                 wqkv_ref, wosa_ref, wq_ref, wkvall_ref, woca_ref,
                 wff1_ref, wff2_ref, o_ref):
    x = x_ref[0].astype(jnp.float32)      # (N, DIM)   one batch element per grid step
    ctx = ctx_ref[0].astype(jnp.float32)  # (M, CTX_DIM)

    # Loop-invariant cross-attn KV projection for ALL layers, hoisted out of the
    # DEPTH loop: (M, CTX_DIM) @ (CTX_DIM, DEPTH*2*INNER=128) -> lane-dense (M, 128).
    kv_all = _mm(ctx, wkvall_ref[...])

    for l in range(DEPTH):                  # DEPTH is static -> unrolled
        # ---- self-attention block: x = x + SA(LN1(x)) ----
        h = _layernorm(x, vecs_ref[l, _LN1_G], vecs_ref[l, _LN1_B])
        qkv = _mm(h, wqkv_ref[l])                                   # (N, 3*INNER)
        sa = _attend(qkv[:, :INNER], qkv[:, INNER:2 * INNER], qkv[:, 2 * INNER:],
                     wosa_ref[l]) + vecs_ref[l, _B_SA]
        x = x + sa

        # ---- cross-attention block: x = x + CA(LN2(x), context) (ctx NOT normed) ----
        h = _layernorm(x, vecs_ref[l, _LN2_G], vecs_ref[l, _LN2_B])
        q = _mm(h, wq_ref[l])                                       # (N, INNER)
        kv_l = kv_all[:, l * 2 * INNER:(l + 1) * 2 * INNER]         # (M, 2*INNER)
        ca = _attend(q, kv_l[:, :INNER], kv_l[:, INNER:],
                     woca_ref[l]) + vecs_ref[l, _B_CA]
        x = x + ca

        # ---- feed-forward block: x = x + FF(LN3(x)) ----
        h = _layernorm(x, vecs_ref[l, _LN3_G], vecs_ref[l, _LN3_B])
        f = _gelu_exact(_mm(h, wff1_ref[l]) + bff1_ref[l])
        f = _mm(f, wff2_ref[l]) + vecs_ref[l, _B_FF2]
        x = x + f

    o_ref[0] = x.astype(o_ref.dtype)


# ------------------------------ wrapper / glue --------------------------------
def transformer_cross_attn(x, context, packed):
    b, n, d = x.shape
    _, m, dc = context.shape

    def whole(a):
        zeros = (0,) * a.ndim
        return pl.BlockSpec(a.shape, lambda bi, _z=zeros: _z)

    weights = (packed['vecs'], packed['b_ff1'],
               packed['w_qkv'], packed['w_out_sa'],
               packed['w_q'], packed['w_kv_all'], packed['w_out_ca'],
               packed['w_ff1'], packed['w_ff2'])

    return pl.pallas_call(
        fused_kernel,
        out_shape=jax.ShapeDtypeStruct((b, n, d), x.dtype),
        grid=(b,),
        in_specs=[pl.BlockSpec((1, n, d), lambda bi: (bi, 0, 0)),
                  pl.BlockSpec((1, m, dc), lambda bi: (bi, 0, 0))]
                 + [whole(w) for w in weights],
        out_specs=pl.BlockSpec((1, n, d), lambda bi: (bi, 0, 0)),
        compiler_params=pltpu.CompilerParams(
            dimension_semantics=("parallel",)),
    )(x, context, *weights)


# ------------------------------ parameter init --------------------------------
def init_params(key):
    """Deterministic synthetic weights. Linear weights stored as (in_dim, out_dim)
    (i.e. transposed relative to torch.nn.Linear.weight)."""
    layers = []
    for _ in range(DEPTH):
        keys = jax.random.split(key, 19)
        key = keys[0]

        def rnd(k, shape, scale=0.05):
            return jax.random.normal(k, shape, dtype=jnp.float32) * scale

        layers.append(dict(
            ln1_g=1.0 + rnd(keys[1], (DIM,)),
            ln1_b=rnd(keys[2], (DIM,)),
            w_qkv=rnd(keys[3], (DIM, 3 * INNER)),
            w_out_sa=rnd(keys[4], (INNER, DIM)),
            b_out_sa=rnd(keys[5], (DIM,)),
            ln2_g=1.0 + rnd(keys[6], (DIM,)),
            ln2_b=rnd(keys[7], (DIM,)),
            w_q=rnd(keys[8], (DIM, INNER)),
            w_kv=rnd(keys[9], (CTX_DIM, 2 * INNER)),
            w_out_ca=rnd(keys[10], (INNER, DIM)),
            b_out_ca=rnd(keys[11], (DIM,)),
            ln3_g=1.0 + rnd(keys[12], (DIM,)),
            ln3_b=rnd(keys[13], (DIM,)),
            w_ff1=rnd(keys[14], (DIM, MLP_DIM)),
            b_ff1=rnd(keys[15], (MLP_DIM,)),
            w_ff2=rnd(keys[16], (MLP_DIM, DIM)),
            b_ff2=rnd(keys[17], (DIM,)),
        ))
    return layers


_VEC_ORDER = ('ln1_g', 'ln1_b', 'b_out_sa', 'ln2_g', 'ln2_b', 'b_out_ca',
              'ln3_g', 'ln3_b', 'b_ff2')


def pack_params(layers):
    """Stack per-layer weights along a leading DEPTH axis; bundle all (DIM,) vectors
    into one (DEPTH, 9, DIM) array; pack ALL layers' cross-attn to_kv weights into one
    (CTX_DIM, DEPTH*2*INNER) matrix so the KV projection is computed once per call.
    Matmul weights are stored in MXU_DTYPE (bf16 on v6e/v7x); vectors stay f32."""
    stack = lambda name: jnp.stack([lyr[name] for lyr in layers])
    vecs = jnp.stack([jnp.stack([lyr[n] for n in _VEC_ORDER]) for lyr in layers])
    wdt = MXU_DTYPE
    return dict(
        vecs=vecs.astype(jnp.float32),                     # (DEPTH, 9, DIM)
        b_ff1=stack('b_ff1').astype(jnp.float32),          # (DEPTH, MLP_DIM)
        w_qkv=stack('w_qkv').astype(wdt),                  # (DEPTH, DIM, 3*INNER)
        w_out_sa=stack('w_out_sa').astype(wdt),            # (DEPTH, INNER, DIM)
        w_q=stack('w_q').astype(wdt),                      # (DEPTH, DIM, INNER)
        w_kv_all=jnp.concatenate([lyr['w_kv'] for lyr in layers],
                                 axis=1).astype(wdt),      # (CTX_DIM, DEPTH*2*INNER)
        w_out_ca=stack('w_out_ca').astype(wdt),            # (DEPTH, INNER, DIM)
        w_ff1=stack('w_ff1').astype(wdt),                  # (DEPTH, DIM, MLP_DIM)
        w_ff2=stack('w_ff2').astype(wdt),                  # (DEPTH, MLP_DIM, DIM)
    )


# --------------------------- pure-JAX reference --------------------------------
def reference_forward(x, context, layers):
    def ln(v, g, b):
        mu = jnp.mean(v, -1, keepdims=True)
        var = jnp.mean((v - mu) ** 2, -1, keepdims=True)
        return (v - mu) / jnp.sqrt(var + LN_EPS) * g + b

    def attend(q, k, v, w_out, b_out):
        bsz, nq, _ = q.shape
        nk = k.shape[1]
        qh = q.reshape(bsz, nq, HEADS, DIM_HEAD).transpose(0, 2, 1, 3)
        kh = k.reshape(bsz, nk, HEADS, DIM_HEAD).transpose(0, 2, 1, 3)
        vh = v.reshape(bsz, nk, HEADS, DIM_HEAD).transpose(0, 2, 1, 3)
        dots = jnp.einsum('bhnd,bhmd->bhnm', qh, kh) * SCALE
        p = jax.nn.softmax(dots, axis=-1)
        o = jnp.einsum('bhnm,bhmd->bhnd', p, vh)
        o = o.transpose(0, 2, 1, 3).reshape(bsz, nq, INNER)
        return o @ w_out + b_out

    for lyr in layers:
        h = ln(x, lyr['ln1_g'], lyr['ln1_b'])
        qkv = h @ lyr['w_qkv']
        x = x + attend(qkv[..., :INNER], qkv[..., INNER:2 * INNER], qkv[..., 2 * INNER:],
                       lyr['w_out_sa'], lyr['b_out_sa'])
        h = ln(x, lyr['ln2_g'], lyr['ln2_b'])
        q = h @ lyr['w_q']
        kv = context @ lyr['w_kv']
        x = x + attend(q, kv[..., :INNER], kv[..., INNER:],
                       lyr['w_out_ca'], lyr['b_out_ca'])
        h = ln(x, lyr['ln3_g'], lyr['ln3_b'])
        f = h @ lyr['w_ff1'] + lyr['b_ff1']
        f = 0.5 * f * (1.0 + lax.erf(f / jnp.sqrt(jnp.float32(2.0))))
        x = x + (f @ lyr['w_ff2'] + lyr['b_ff2'])
    return x


# ----------------------------------- main --------------------------------------
if __name__ == "__main__":
    key = jax.random.PRNGKey(0)
    kx, kc, kp = jax.random.split(key, 3)

    x = jax.random.normal(kx, (B, N, DIM), dtype=jnp.float32)
    context = jax.random.normal(kc, (B, M, CTX_DIM), dtype=jnp.float32)
    layers = init_params(kp)
    packed = pack_params(layers)

    fwd = jax.jit(transformer_cross_attn)
    out = fwd(x, context, packed)
    jax.block_until_ready(out)

    assert out.shape == (B, N, DIM) and out.dtype == jnp.float32
    assert bool(jnp.all(jnp.isfinite(out)))

    ref = reference_forward(x, context, layers)
    max_err = float(jnp.max(jnp.abs(out - ref)))
    tol = 1e-3 if MXU_DTYPE == jnp.float32 else 1e-1   # bf16 MXU operands drift slightly
    assert max_err < tol, f"max abs error {max_err} exceeds tolerance {tol}"

    print("KERNEL_OK")
</pallas_src>

<mosaic_0001>
module attributes {stable_mosaic.version = 11 : i64} {
  func.func @fused_kernel(%arg0: i32, %arg1: memref<1x8x32xf32, #tpu.memory_space<vmem>>, %arg2: memref<1x8x32xf32, #tpu.memory_space<vmem>>, %arg3: memref<2x9x32xf32, #tpu.memory_space<vmem>>, %arg4: memref<2x64xf32, #tpu.memory_space<vmem>>, %arg5: memref<2x32x96xf32, #tpu.memory_space<vmem>>, %arg6: memref<2x32x32xf32, #tpu.memory_space<vmem>>, %arg7: memref<2x32x32xf32, #tpu.memory_space<vmem>>, %arg8: memref<32x128xf32, #tpu.memory_space<vmem>>, %arg9: memref<2x32x32xf32, #tpu.memory_space<vmem>>, %arg10: memref<2x32x64xf32, #tpu.memory_space<vmem>>, %arg11: memref<2x64x32xf32, #tpu.memory_space<vmem>>, %arg12: memref<1x8x32xf32, #tpu.memory_space<vmem>>) attributes {dimension_semantics = [#tpu.dimension_semantics<parallel>], iteration_bounds = array<i64: 2>, scalar_prefetch = 0 : i64, scratch_operands = 0 : i64, tpu.core_type = #tpu.core_type<tc>, window_params = [{transform_indices = @transform_0, window_bounds = array<i64: 1, 8, 32>}, {transform_indices = @transform_1, window_bounds = array<i64: 1, 8, 32>}, {pipeline_mode = #tpu.pipeline_mode<synchronous>, transform_indices = @transform_2, window_bounds = array<i64: 2, 9, 32>}, {pipeline_mode = #tpu.pipeline_mode<synchronous>, transform_indices = @transform_3, window_bounds = array<i64: 2, 64>}, {pipeline_mode = #tpu.pipeline_mode<synchronous>, transform_indices = @transform_4, window_bounds = array<i64: 2, 32, 96>}, {pipeline_mode = #tpu.pipeline_mode<synchronous>, transform_indices = @transform_5, window_bounds = array<i64: 2, 32, 32>}, {pipeline_mode = #tpu.pipeline_mode<synchronous>, transform_indices = @transform_6, window_bounds = array<i64: 2, 32, 32>}, {pipeline_mode = #tpu.pipeline_mode<synchronous>, transform_indices = @transform_7, window_bounds = array<i64: 32, 128>}, {pipeline_mode = #tpu.pipeline_mode<synchronous>, transform_indices = @transform_8, window_bounds = array<i64: 2, 32, 32>}, {pipeline_mode = #tpu.pipeline_mode<synchronous>, transform_indices = @transform_9, window_bounds = array<i64: 2, 32, 64>}, {pipeline_mode = #tpu.pipeline_mode<synchronous>, transform_indices = @transform_10, window_bounds = array<i64: 2, 64, 32>}, {transform_indices = @transform_11, window_bounds = array<i64: 1, 8, 32>}]} {
    %c0 = arith.constant 0 : index
    %c0_0 = arith.constant 0 : index
    %c0_1 = arith.constant 0 : index
    %0 = vector.load %arg1[%c0, %c0_0, %c0_1] : memref<1x8x32xf32, #tpu.memory_space<vmem>>, vector<1x8x32xf32>
    %1 = vector.shape_cast %0 : vector<1x8x32xf32> to vector<8x32xf32>
    %c0_2 = arith.constant 0 : index
    %c0_3 = arith.constant 0 : index
    %c0_4 = arith.constant 0 : index
    %2 = vector.load %arg2[%c0_2, %c0_3, %c0_4] : memref<1x8x32xf32, #tpu.memory_space<vmem>>, vector<1x8x32xf32>
    %3 = vector.shape_cast %2 : vector<1x8x32xf32> to vector<8x32xf32>
    %c0_5 = arith.constant 0 : index
    %c0_6 = arith.constant 0 : index
    %4 = vector.load %arg8[%c0_5, %c0_6] : memref<32x128xf32, #tpu.memory_space<vmem>>, vector<32x128xf32>
    %cst = arith.constant dense<0.000000e+00> : vector<8x128xf32>
    %5 = tpu.matmul %3, %4, %cst {dimension_numbers = #tpu.dot_dimension_numbers<[1], [0], [0], [1], [0, 0, 1, 1], [], []>} : vector<8x32xf32>, vector<32x128xf32>, vector<8x128xf32> -> vector<8x128xf32>
    %c0_7 = arith.constant 0 : index
    %c0_8 = arith.constant 0 : index
    %c0_9 = arith.constant 0 : index
    %6 = vector.load %arg3[%c0_7, %c0_8, %c0_9] : memref<2x9x32xf32, #tpu.memory_space<vmem>>, vector<1x1x32xf32>
    %7 = vector.shape_cast %6 : vector<1x1x32xf32> to vector<32xf32>
    %c0_10 = arith.constant 0 : index
    %c1 = arith.constant 1 : index
    %c0_11 = arith.constant 0 : index
    %8 = vector.load %arg3[%c0_10, %c1, %c0_11] : memref<2x9x32xf32, #tpu.memory_space<vmem>>, vector<1x1x32xf32>
    %9 = vector.shape_cast %8 : vector<1x1x32xf32> to vector<32xf32>
    %cst_12 = arith.constant dense<0.000000e+00> : vector<8xf32>
    %10 = vector.multi_reduction <add>, %1, %cst_12 [1] : vector<8x32xf32> to vector<8xf32>
    %11 = vector.shape_cast %10 : vector<8xf32> to vector<8x1xf32>
    %cst_13 = arith.constant 3.200000e+01 : f32
    %12 = vector.broadcast %cst_13 : f32 to vector<8x1xf32>
    %13 = arith.divf %11, %12 : vector<8x1xf32>
    %14 = arith.mulf %1, %1 : vector<8x32xf32>
    %cst_14 = arith.constant dense<0.000000e+00> : vector<8xf32>
    %15 = vector.multi_reduction <add>, %14, %cst_14 [1] : vector<8x32xf32> to vector<8xf32>
    %16 = vector.shape_cast %15 : vector<8xf32> to vector<8x1xf32>
    %cst_15 = arith.constant 3.200000e+01 : f32
    %17 = vector.broadcast %cst_15 : f32 to vector<8x1xf32>
    %18 = arith.divf %16, %17 : vector<8x1xf32>
    %19 = arith.mulf %13, %13 : vector<8x1xf32>
    %20 = arith.subf %18, %19 : vector<8x1xf32>
    %cst_16 = arith.constant 0.000000e+00 : f32
    %21 = vector.broadcast %cst_16 : f32 to vector<8x1xf32>
    %22 = arith.maximumf %20, %21 : vector<8x1xf32>
    %23 = vector.broadcast %13 : vector<8x1xf32> to vector<8x32xf32>
    %24 = arith.subf %1, %23 : vector<8x32xf32>
    %cst_17 = arith.constant 9.99999974E-6 : f32
    %25 = vector.broadcast %cst_17 : f32 to vector<8x1xf32>
    %26 = arith.addf %22, %25 : vector<8x1xf32>
    %27 = math.rsqrt %26 : vector<8x1xf32>
    %28 = vector.broadcast %27 : vector<8x1xf32> to vector<8x32xf32>
    %29 = arith.mulf %24, %28 : vector<8x32xf32>
    %30 = vector.shape_cast %7 : vector<32xf32> to vector<1x32xf32>
    %31 = vector.broadcast %30 : vector<1x32xf32> to vector<8x32xf32>
    %32 = arith.mulf %29, %31 : vector<8x32xf32>
    %33 = vector.shape_cast %9 : vector<32xf32> to vector<1x32xf32>
    %34 = vector.broadcast %33 : vector<1x32xf32> to vector<8x32xf32>
    %35 = arith.addf %32, %34 : vector<8x32xf32>
    %c0_18 = arith.constant 0 : index
    %c0_19 = arith.constant 0 : index
    %c0_20 = arith.constant 0 : index
    %36 = vector.load %arg5[%c0_18, %c0_19, %c0_20] : memref<2x32x96xf32, #tpu.memory_space<vmem>>, vector<1x32x96xf32>
    %37 = vector.shape_cast %36 : vector<1x32x96xf32> to vector<32x96xf32>
    %cst_21 = arith.constant dense<0.000000e+00> : vector<8x96xf32>
    %38 = tpu.matmul %35, %37, %cst_21 {dimension_numbers = #tpu.dot_dimension_numbers<[1], [0], [0], [1], [0, 0, 1, 1], [], []>} : vector<8x32xf32>, vector<32x96xf32>, vector<8x96xf32> -> vector<8x96xf32>
    %39 = vector.extract_strided_slice %38 {offsets = [0, 0], sizes = [8, 32], strides = [1, 1]} : vector<8x96xf32> to vector<8x32xf32>
    %40 = vector.extract_strided_slice %38 {offsets = [0, 32], sizes = [8, 32], strides = [1, 1]} : vector<8x96xf32> to vector<8x32xf32>
    %41 = vector.extract_strided_slice %38 {offsets = [0, 64], sizes = [8, 32], strides = [1, 1]} : vector<8x96xf32> to vector<8x32xf32>
    %c0_22 = arith.constant 0 : index
    %c0_23 = arith.constant 0 : index
    %c0_24 = arith.constant 0 : index
    %42 = vector.load %arg6[%c0_22, %c0_23, %c0_24] : memref<2x32x32xf32, #tpu.memory_space<vmem>>, vector<1x32x32xf32>
    %43 = vector.shape_cast %42 : vector<1x32x32xf32> to vector<32x32xf32>
    %44 = vector.extract_strided_slice %39 {offsets = [0, 0], sizes = [8, 16], strides = [1, 1]} : vector<8x32xf32> to vector<8x16xf32>
    %45 = vector.extract_strided_slice %40 {offsets = [0, 0], sizes = [8, 16], strides = [1, 1]} : vector<8x32xf32> to vector<8x16xf32>
    %46 = vector.extract_strided_slice %41 {offsets = [0, 0], sizes = [8, 16], strides = [1, 1]} : vector<8x32xf32> to vector<8x16xf32>
    %cst_25 = arith.constant dense<0.000000e+00> : vector<8x8xf32>
    %47 = tpu.matmul %44, %45, %cst_25 {dimension_numbers = #tpu.dot_dimension_numbers<[1], [1], [0], [0], [0, 0, 1, 0], [], []>} : vector<8x16xf32>, vector<8x16xf32>, vector<8x8xf32> -> vector<8x8xf32>
    %cst_26 = arith.constant 2.500000e-01 : f32
    %48 = vector.broadcast %cst_26 : f32 to vector<8x8xf32>
    %49 = arith.mulf %47, %48 : vector<8x8xf32>
    %cst_27 = arith.constant dense<0xFF800000> : vector<8xf32>
    %50 = vector.multi_reduction <maximumf>, %49, %cst_27 [1] : vector<8x8xf32> to vector<8xf32>
    %51 = vector.shape_cast %50 : vector<8xf32> to vector<8x1xf32>
    %52 = vector.broadcast %51 : vector<8x1xf32> to vector<8x8xf32>
    %53 = arith.subf %49, %52 : vector<8x8xf32>
    %54 = math.exp %53 : vector<8x8xf32>
    %cst_28 = arith.constant dense<0.000000e+00> : vector<8xf32>
    %55 = vector.multi_reduction <add>, %54, %cst_28 [1] : vector<8x8xf32> to vector<8xf32>
    %56 = vector.shape_cast %55 : vector<8xf32> to vector<8x1xf32>
    %57 = vector.broadcast %56 : vector<8x1xf32> to vector<8x8xf32>
    %58 = arith.divf %54, %57 : vector<8x8xf32>
    %cst_29 = arith.constant dense<0.000000e+00> : vector<8x16xf32>
    %59 = tpu.matmul %58, %46, %cst_29 {dimension_numbers = #tpu.dot_dimension_numbers<[1], [0], [0], [1], [0, 0, 1, 1], [], []>} : vector<8x8xf32>, vector<8x16xf32>, vector<8x16xf32> -> vector<8x16xf32>
    %60 = vector.extract_strided_slice %39 {offsets = [0, 16], sizes = [8, 16], strides = [1, 1]} : vector<8x32xf32> to vector<8x16xf32>
    %61 = vector.extract_strided_slice %40 {offsets = [0, 16], sizes = [8, 16], strides = [1, 1]} : vector<8x32xf32> to vector<8x16xf32>
    %62 = vector.extract_strided_slice %41 {offsets = [0, 16], sizes = [8, 16], strides = [1, 1]} : vector<8x32xf32> to vector<8x16xf32>
    %cst_30 = arith.constant dense<0.000000e+00> : vector<8x8xf32>
    %63 = tpu.matmul %60, %61, %cst_30 {dimension_numbers = #tpu.dot_dimension_numbers<[1], [1], [0], [0], [0, 0, 1, 0], [], []>} : vector<8x16xf32>, vector<8x16xf32>, vector<8x8xf32> -> vector<8x8xf32>
    %cst_31 = arith.constant 2.500000e-01 : f32
    %64 = vector.broadcast %cst_31 : f32 to vector<8x8xf32>
    %65 = arith.mulf %63, %64 : vector<8x8xf32>
    %cst_32 = arith.constant dense<0xFF800000> : vector<8xf32>
    %66 = vector.multi_reduction <maximumf>, %65, %cst_32 [1] : vector<8x8xf32> to vector<8xf32>
    %67 = vector.shape_cast %66 : vector<8xf32> to vector<8x1xf32>
    %68 = vector.broadcast %67 : vector<8x1xf32> to vector<8x8xf32>
    %69 = arith.subf %65, %68 : vector<8x8xf32>
    %70 = math.exp %69 : vector<8x8xf32>
    %cst_33 = arith.constant dense<0.000000e+00> : vector<8xf32>
    %71 = vector.multi_reduction <add>, %70, %cst_33 [1] : vector<8x8xf32> to vector<8xf32>
    %72 = vector.shape_cast %71 : vector<8xf32> to vector<8x1xf32>
    %73 = vector.broadcast %72 : vector<8x1xf32> to vector<8x8xf32>
    %74 = arith.divf %70, %73 : vector<8x8xf32>
    %cst_34 = arith.constant dense<0.000000e+00> : vector<8x16xf32>
    %75 = tpu.matmul %74, %62, %cst_34 {dimension_numbers = #tpu.dot_dimension_numbers<[1], [0], [0], [1], [0, 0, 1, 1], [], []>} : vector<8x8xf32>, vector<8x16xf32>, vector<8x16xf32> -> vector<8x16xf32>
    %76 = tpu.concatenate %59, %75 in 1 : vector<8x16xf32>, vector<8x16xf32> -> vector<8x32xf32>
    %cst_35 = arith.constant dense<0.000000e+00> : vector<8x32xf32>
    %77 = tpu.matmul %76, %43, %cst_35 {dimension_numbers = #tpu.dot_dimension_numbers<[1], [0], [0], [1], [0, 0, 1, 1], [], []>} : vector<8x32xf32>, vector<32x32xf32>, vector<8x32xf32> -> vector<8x32xf32>
    %c0_36 = arith.constant 0 : index
    %c2 = arith.constant 2 : index
    %c0_37 = arith.constant 0 : index
    %78 = vector.load %arg3[%c0_36, %c2, %c0_37] : memref<2x9x32xf32, #tpu.memory_space<vmem>>, vector<1x1x32xf32>
    %79 = vector.shape_cast %78 : vector<1x1x32xf32> to vector<32xf32>
    %80 = vector.shape_cast %79 : vector<32xf32> to vector<1x32xf32>
    %81 = vector.broadcast %80 : vector<1x32xf32> to vector<8x32xf32>
    %82 = arith.addf %77, %81 : vector<8x32xf32>
    %83 = arith.addf %1, %82 : vector<8x32xf32>
    %c0_38 = arith.constant 0 : index
    %c3 = arith.constant 3 : index
    %c0_39 = arith.constant 0 : index
    %84 = vector.load %arg3[%c0_38, %c3, %c0_39] : memref<2x9x32xf32, #tpu.memory_space<vmem>>, vector<1x1x32xf32>
    %85 = vector.shape_cast %84 : vector<1x1x32xf32> to vector<32xf32>
    %c0_40 = arith.constant 0 : index
    %c4 = arith.constant 4 : index
    %c0_41 = arith.constant 0 : index
    %86 = vector.load %arg3[%c0_40, %c4, %c0_41] : memref<2x9x32xf32, #tpu.memory_space<vmem>>, vector<1x1x32xf32>
    %87 = vector.shape_cast %86 : vector<1x1x32xf32> to vector<32xf32>
    %cst_42 = arith.constant dense<0.000000e+00> : vector<8xf32>
    %88 = vector.multi_reduction <add>, %83, %cst_42 [1] : vector<8x32xf32> to vector<8xf32>
    %89 = vector.shape_cast %88 : vector<8xf32> to vector<8x1xf32>
    %cst_43 = arith.constant 3.200000e+01 : f32
    %90 = vector.broadcast %cst_43 : f32 to vector<8x1xf32>
    %91 = arith.divf %89, %90 : vector<8x1xf32>
    %92 = arith.mulf %83, %83 : vector<8x32xf32>
    %cst_44 = arith.constant dense<0.000000e+00> : vector<8xf32>
    %93 = vector.multi_reduction <add>, %92, %cst_44 [1] : vector<8x32xf32> to vector<8xf32>
    %94 = vector.shape_cast %93 : vector<8xf32> to vector<8x1xf32>
    %cst_45 = arith.constant 3.200000e+01 : f32
    %95 = vector.broadcast %cst_45 : f32 to vector<8x1xf32>
    %96 = arith.divf %94, %95 : vector<8x1xf32>
    %97 = arith.mulf %91, %91 : vector<8x1xf32>
    %98 = arith.subf %96, %97 : vector<8x1xf32>
    %cst_46 = arith.constant 0.000000e+00 : f32
    %99 = vector.broadcast %cst_46 : f32 to vector<8x1xf32>
    %100 = arith.maximumf %98, %99 : vector<8x1xf32>
    %101 = vector.broadcast %91 : vector<8x1xf32> to vector<8x32xf32>
    %102 = arith.subf %83, %101 : vector<8x32xf32>
    %cst_47 = arith.constant 9.99999974E-6 : f32
    %103 = vector.broadcast %cst_47 : f32 to vector<8x1xf32>
    %104 = arith.addf %100, %103 : vector<8x1xf32>
    %105 = math.rsqrt %104 : vector<8x1xf32>
    %106 = vector.broadcast %105 : vector<8x1xf32> to vector<8x32xf32>
    %107 = arith.mulf %102, %106 : vector<8x32xf32>
    %108 = vector.shape_cast %85 : vector<32xf32> to vector<1x32xf32>
    %109 = vector.broadcast %108 : vector<1x32xf32> to vector<8x32xf32>
    %110 = arith.mulf %107, %109 : vector<8x32xf32>
    %111 = vector.shape_cast %87 : vector<32xf32> to vector<1x32xf32>
    %112 = vector.broadcast %111 : vector<1x32xf32> to vector<8x32xf32>
    %113 = arith.addf %110, %112 : vector<8x32xf32>
    %c0_48 = arith.constant 0 : index
    %c0_49 = arith.constant 0 : index
    %c0_50 = arith.constant 0 : index
    %114 = vector.load %arg7[%c0_48, %c0_49, %c0_50] : memref<2x32x32xf32, #tpu.memory_space<vmem>>, vector<1x32x32xf32>
    %115 = vector.shape_cast %114 : vector<1x32x32xf32> to vector<32x32xf32>
    %cst_51 = arith.constant dense<0.000000e+00> : vector<8x32xf32>
    %116 = tpu.matmul %113, %115, %cst_51 {dimension_numbers = #tpu.dot_dimension_numbers<[1], [0], [0], [1], [0, 0, 1, 1], [], []>} : vector<8x32xf32>, vector<32x32xf32>, vector<8x32xf32> -> vector<8x32xf32>
    %117 = vector.extract_strided_slice %5 {offsets = [0, 0], sizes = [8, 64], strides = [1, 1]} : vector<8x128xf32> to vector<8x64xf32>
    %118 = vector.extract_strided_slice %117 {offsets = [0, 0], sizes = [8, 32], strides = [1, 1]} : vector<8x64xf32> to vector<8x32xf32>
    %119 = vector.extract_strided_slice %117 {offsets = [0, 32], sizes = [8, 32], strides = [1, 1]} : vector<8x64xf32> to vector<8x32xf32>
    %c0_52 = arith.constant 0 : index
    %c0_53 = arith.constant 0 : index
    %c0_54 = arith.constant 0 : index
    %120 = vector.load %arg9[%c0_52, %c0_53, %c0_54] : memref<2x32x32xf32, #tpu.memory_space<vmem>>, vector<1x32x32xf32>
    %121 = vector.shape_cast %120 : vector<1x32x32xf32> to vector<32x32xf32>
    %122 = vector.extract_strided_slice %116 {offsets = [0, 0], sizes = [8, 16], strides = [1, 1]} : vector<8x32xf32> to vector<8x16xf32>
    %123 = vector.extract_strided_slice %118 {offsets = [0, 0], sizes = [8, 16], strides = [1, 1]} : vector<8x32xf32> to vector<8x16xf32>
    %124 = vector.extract_strided_slice %119 {offsets = [0, 0], sizes = [8, 16], strides = [1, 1]} : vector<8x32xf32> to vector<8x16xf32>
    %cst_55 = arith.constant dense<0.000000e+00> : vector<8x8xf32>
    %125 = tpu.matmul %122, %123, %cst_55 {dimension_numbers = #tpu.dot_dimension_numbers<[1], [1], [0], [0], [0, 0, 1, 0], [], []>} : vector<8x16xf32>, vector<8x16xf32>, vector<8x8xf32> -> vector<8x8xf32>
    %cst_56 = arith.constant 2.500000e-01 : f32
    %126 = vector.broadcast %cst_56 : f32 to vector<8x8xf32>
    %127 = arith.mulf %125, %126 : vector<8x8xf32>
    %cst_57 = arith.constant dense<0xFF800000> : vector<8xf32>
    %128 = vector.multi_reduction <maximumf>, %127, %cst_57 [1] : vector<8x8xf32> to vector<8xf32>
    %129 = vector.shape_cast %128 : vector<8xf32> to vector<8x1xf32>
    %130 = vector.broadcast %129 : vector<8x1xf32> to vector<8x8xf32>
    %131 = arith.subf %127, %130 : vector<8x8xf32>
    %132 = math.exp %131 : vector<8x8xf32>
    %cst_58 = arith.constant dense<0.000000e+00> : vector<8xf32>
    %133 = vector.multi_reduction <add>, %132, %cst_58 [1] : vector<8x8xf32> to vector<8xf32>
    %134 = vector.shape_cast %133 : vector<8xf32> to vector<8x1xf32>
    %135 = vector.broadcast %134 : vector<8x1xf32> to vector<8x8xf32>
    %136 = arith.divf %132, %135 : vector<8x8xf32>
    %cst_59 = arith.constant dense<0.000000e+00> : vector<8x16xf32>
    %137 = tpu.matmul %136, %124, %cst_59 {dimension_numbers = #tpu.dot_dimension_numbers<[1], [0], [0], [1], [0, 0, 1, 1], [], []>} : vector<8x8xf32>, vector<8x16xf32>, vector<8x16xf32> -> vector<8x16xf32>
    %138 = vector.extract_strided_slice %116 {offsets = [0, 16], sizes = [8, 16], strides = [1, 1]} : vector<8x32xf32> to vector<8x16xf32>
    %139 = vector.extract_strided_slice %118 {offsets = [0, 16], sizes = [8, 16], strides = [1, 1]} : vector<8x32xf32> to vector<8x16xf32>
    %140 = vector.extract_strided_slice %119 {offsets = [0, 16], sizes = [8, 16], strides = [1, 1]} : vector<8x32xf32> to vector<8x16xf32>
    %cst_60 = arith.constant dense<0.000000e+00> : vector<8x8xf32>
    %141 = tpu.matmul %138, %139, %cst_60 {dimension_numbers = #tpu.dot_dimension_numbers<[1], [1], [0], [0], [0, 0, 1, 0], [], []>} : vector<8x16xf32>, vector<8x16xf32>, vector<8x8xf32> -> vector<8x8xf32>
    %cst_61 = arith.constant 2.500000e-01 : f32
    %142 = vector.broadcast %cst_61 : f32 to vector<8x8xf32>
    %143 = arith.mulf %141, %142 : vector<8x8xf32>
    %cst_62 = arith.constant dense<0xFF800000> : vector<8xf32>
    %144 = vector.multi_reduction <maximumf>, %143, %cst_62 [1] : vector<8x8xf32> to vector<8xf32>
    %145 = vector.shape_cast %144 : vector<8xf32> to vector<8x1xf32>
    %146 = vector.broadcast %145 : vector<8x1xf32> to vector<8x8xf32>
    %147 = arith.subf %143, %146 : vector<8x8xf32>
    %148 = math.exp %147 : vector<8x8xf32>
    %cst_63 = arith.constant dense<0.000000e+00> : vector<8xf32>
    %149 = vector.multi_reduction <add>, %148, %cst_63 [1] : vector<8x8xf32> to vector<8xf32>
    %150 = vector.shape_cast %149 : vector<8xf32> to vector<8x1xf32>
    %151 = vector.broadcast %150 : vector<8x1xf32> to vector<8x8xf32>
    %152 = arith.divf %148, %151 : vector<8x8xf32>
    %cst_64 = arith.constant dense<0.000000e+00> : vector<8x16xf32>
    %153 = tpu.matmul %152, %140, %cst_64 {dimension_numbers = #tpu.dot_dimension_numbers<[1], [0], [0], [1], [0, 0, 1, 1], [], []>} : vector<8x8xf32>, vector<8x16xf32>, vector<8x16xf32> -> vector<8x16xf32>
    %154 = tpu.concatenate %137, %153 in 1 : vector<8x16xf32>, vector<8x16xf32> -> vector<8x32xf32>
    %cst_65 = arith.constant dense<0.000000e+00> : vector<8x32xf32>
    %155 = tpu.matmul %154, %121, %cst_65 {dimension_numbers = #tpu.dot_dimension_numbers<[1], [0], [0], [1], [0, 0, 1, 1], [], []>} : vector<8x32xf32>, vector<32x32xf32>, vector<8x32xf32> -> vector<8x32xf32>
    %c0_66 = arith.constant 0 : index
    %c5 = arith.constant 5 : index
    %c0_67 = arith.constant 0 : index
    %156 = vector.load %arg3[%c0_66, %c5, %c0_67] : memref<2x9x32xf32, #tpu.memory_space<vmem>>, vector<1x1x32xf32>
    %157 = vector.shape_cast %156 : vector<1x1x32xf32> to vector<32xf32>
    %158 = vector.shape_cast %157 : vector<32xf32> to vector<1x32xf32>
    %159 = vector.broadcast %158 : vector<1x32xf32> to vector<8x32xf32>
    %160 = arith.addf %155, %159 : vector<8x32xf32>
    %161 = arith.addf %83, %160 : vector<8x32xf32>
    %c0_68 = arith.constant 0 : index
    %c6 = arith.constant 6 : index
    %c0_69 = arith.constant 0 : index
    %162 = vector.load %arg3[%c0_68, %c6, %c0_69] : memref<2x9x32xf32, #tpu.memory_space<vmem>>, vector<1x1x32xf32>
    %163 = vector.shape_cast %162 : vector<1x1x32xf32> to vector<32xf32>
    %c0_70 = arith.constant 0 : index
    %c7 = arith.constant 7 : index
    %c0_71 = arith.constant 0 : index
    %164 = vector.load %arg3[%c0_70, %c7, %c0_71] : memref<2x9x32xf32, #tpu.memory_space<vmem>>, vector<1x1x32xf32>
    %165 = vector.shape_cast %164 : vector<1x1x32xf32> to vector<32xf32>
    %cst_72 = arith.constant dense<0.000000e+00> : vector<8xf32>
    %166 = vector.multi_reduction <add>, %161, %cst_72 [1] : vector<8x32xf32> to vector<8xf32>
    %167 = vector.shape_cast %166 : vector<8xf32> to vector<8x1xf32>
    %cst_73 = arith.constant 3.200000e+01 : f32
    %168 = vector.broadcast %cst_73 : f32 to vector<8x1xf32>
    %169 = arith.divf %167, %168 : vector<8x1xf32>
    %170 = arith.mulf %161, %161 : vector<8x32xf32>
    %cst_74 = arith.constant dense<0.000000e+00> : vector<8xf32>
    %171 = vector.multi_reduction <add>, %170, %cst_74 [1] : vector<8x32xf32> to vector<8xf32>
    %172 = vector.shape_cast %171 : vector<8xf32> to vector<8x1xf32>
    %cst_75 = arith.constant 3.200000e+01 : f32
    %173 = vector.broadcast %cst_75 : f32 to vector<8x1xf32>
    %174 = arith.divf %172, %173 : vector<8x1xf32>
    %175 = arith.mulf %169, %169 : vector<8x1xf32>
    %176 = arith.subf %174, %175 : vector<8x1xf32>
    %cst_76 = arith.constant 0.000000e+00 : f32
    %177 = vector.broadcast %cst_76 : f32 to vector<8x1xf32>
    %178 = arith.maximumf %176, %177 : vector<8x1xf32>
    %179 = vector.broadcast %169 : vector<8x1xf32> to vector<8x32xf32>
    %180 = arith.subf %161, %179 : vector<8x32xf32>
    %cst_77 = arith.constant 9.99999974E-6 : f32
    %181 = vector.broadcast %cst_77 : f32 to vector<8x1xf32>
    %182 = arith.addf %178, %181 : vector<8x1xf32>
    %183 = math.rsqrt %182 : vector<8x1xf32>
    %184 = vector.broadcast %183 : vector<8x1xf32> to vector<8x32xf32>
    %185 = arith.mulf %180, %184 : vector<8x32xf32>
    %186 = vector.shape_cast %163 : vector<32xf32> to vector<1x32xf32>
    %187 = vector.broadcast %186 : vector<1x32xf32> to vector<8x32xf32>
    %188 = arith.mulf %185, %187 : vector<8x32xf32>
    %189 = vector.shape_cast %165 : vector<32xf32> to vector<1x32xf32>
    %190 = vector.broadcast %189 : vector<1x32xf32> to vector<8x32xf32>
    %191 = arith.addf %188, %190 : vector<8x32xf32>
    %c0_78 = arith.constant 0 : index
    %c0_79 = arith.constant 0 : index
    %c0_80 = arith.constant 0 : index
    %192 = vector.load %arg10[%c0_78, %c0_79, %c0_80] : memref<2x32x64xf32, #tpu.memory_space<vmem>>, vector<1x32x64xf32>
    %193 = vector.shape_cast %192 : vector<1x32x64xf32> to vector<32x64xf32>
    %cst_81 = arith.constant dense<0.000000e+00> : vector<8x64xf32>
    %194 = tpu.matmul %191, %193, %cst_81 {dimension_numbers = #tpu.dot_dimension_numbers<[1], [0], [0], [1], [0, 0, 1, 1], [], []>} : vector<8x32xf32>, vector<32x64xf32>, vector<8x64xf32> -> vector<8x64xf32>
    %c0_82 = arith.constant 0 : index
    %c0_83 = arith.constant 0 : index
    %195 = vector.load %arg4[%c0_82, %c0_83] : memref<2x64xf32, #tpu.memory_space<vmem>>, vector<1x64xf32>
    %196 = vector.shape_cast %195 : vector<1x64xf32> to vector<64xf32>
    %197 = vector.shape_cast %196 : vector<64xf32> to vector<1x64xf32>
    %198 = vector.broadcast %197 : vector<1x64xf32> to vector<8x64xf32>
    %199 = arith.addf %194, %198 : vector<8x64xf32>
    %cst_84 = arith.constant 5.000000e-01 : f32
    %200 = vector.broadcast %cst_84 : f32 to vector<8x64xf32>
    %201 = arith.mulf %200, %199 : vector<8x64xf32>
    %cst_85 = arith.constant 2.000000e+00 : f32
    %202 = math.sqrt %cst_85 : f32
    %cst_86 = arith.constant 1.000000e+00 : f32
    %203 = arith.divf %cst_86, %202 : f32
    %204 = vector.broadcast %203 : f32 to vector<8x64xf32>
    %205 = arith.mulf %199, %204 : vector<8x64xf32>
    %206 = math.erf %205 : vector<8x64xf32>
    %cst_87 = arith.constant 1.000000e+00 : f32
    %207 = vector.broadcast %cst_87 : f32 to vector<8x64xf32>
    %208 = arith.addf %207, %206 : vector<8x64xf32>
    %209 = arith.mulf %201, %208 : vector<8x64xf32>
    %c0_88 = arith.constant 0 : index
    %c0_89 = arith.constant 0 : index
    %c0_90 = arith.constant 0 : index
    %210 = vector.load %arg11[%c0_88, %c0_89, %c0_90] : memref<2x64x32xf32, #tpu.memory_space<vmem>>, vector<1x64x32xf32>
    %211 = vector.shape_cast %210 : vector<1x64x32xf32> to vector<64x32xf32>
    %cst_91 = arith.constant dense<0.000000e+00> : vector<8x32xf32>
    %212 = tpu.matmul %209, %211, %cst_91 {dimension_numbers = #tpu.dot_dimension_numbers<[1], [0], [0], [1], [0, 0, 1, 1], [], []>} : vector<8x64xf32>, vector<64x32xf32>, vector<8x32xf32> -> vector<8x32xf32>
    %c0_92 = arith.constant 0 : index
    %c8 = arith.constant 8 : index
    %c0_93 = arith.constant 0 : index
    %213 = vector.load %arg3[%c0_92, %c8, %c0_93] : memref<2x9x32xf32, #tpu.memory_space<vmem>>, vector<1x1x32xf32>
    %214 = vector.shape_cast %213 : vector<1x1x32xf32> to vector<32xf32>
    %215 = vector.shape_cast %214 : vector<32xf32> to vector<1x32xf32>
    %216 = vector.broadcast %215 : vector<1x32xf32> to vector<8x32xf32>
    %217 = arith.addf %212, %216 : vector<8x32xf32>
    %218 = arith.addf %161, %217 : vector<8x32xf32>
    %c1_94 = arith.constant 1 : index
    %c0_95 = arith.constant 0 : index
    %c0_96 = arith.constant 0 : index
    %219 = vector.load %arg3[%c1_94, %c0_95, %c0_96] : memref<2x9x32xf32, #tpu.memory_space<vmem>>, vector<1x1x32xf32>
    %220 = vector.shape_cast %219 : vector<1x1x32xf32> to vector<32xf32>
    %c1_97 = arith.constant 1 : index
    %c1_98 = arith.constant 1 : index
    %c0_99 = arith.constant 0 : index
    %221 = vector.load %arg3[%c1_97, %c1_98, %c0_99] : memref<2x9x32xf32, #tpu.memory_space<vmem>>, vector<1x1x32xf32>
    %222 = vector.shape_cast %221 : vector<1x1x32xf32> to vector<32xf32>
    %cst_100 = arith.constant dense<0.000000e+00> : vector<8xf32>
    %223 = vector.multi_reduction <add>, %218, %cst_100 [1] : vector<8x32xf32> to vector<8xf32>
    %224 = vector.shape_cast %223 : vector<8xf32> to vector<8x1xf32>
    %cst_101 = arith.constant 3.200000e+01 : f32
    %225 = vector.broadcast %cst_101 : f32 to vector<8x1xf32>
    %226 = arith.divf %224, %225 : vector<8x1xf32>
    %227 = arith.mulf %218, %218 : vector<8x32xf32>
    %cst_102 = arith.constant dense<0.000000e+00> : vector<8xf32>
    %228 = vector.multi_reduction <add>, %227, %cst_102 [1] : vector<8x32xf32> to vector<8xf32>
    %229 = vector.shape_cast %228 : vector<8xf32> to vector<8x1xf32>
    %cst_103 = arith.constant 3.200000e+01 : f32
    %230 = vector.broadcast %cst_103 : f32 to vector<8x1xf32>
    %231 = arith.divf %229, %230 : vector<8x1xf32>
    %232 = arith.mulf %226, %226 : vector<8x1xf32>
    %233 = arith.subf %231, %232 : vector<8x1xf32>
    %cst_104 = arith.constant 0.000000e+00 : f32
    %234 = vector.broadcast %cst_104 : f32 to vector<8x1xf32>
    %235 = arith.maximumf %233, %234 : vector<8x1xf32>
    %236 = vector.broadcast %226 : vector<8x1xf32> to vector<8x32xf32>
    %237 = arith.subf %218, %236 : vector<8x32xf32>
    %cst_105 = arith.constant 9.99999974E-6 : f32
    %238 = vector.broadcast %cst_105 : f32 to vector<8x1xf32>
    %239 = arith.addf %235, %238 : vector<8x1xf32>
    %240 = math.rsqrt %239 : vector<8x1xf32>
    %241 = vector.broadcast %240 : vector<8x1xf32> to vector<8x32xf32>
    %242 = arith.mulf %237, %241 : vector<8x32xf32>
    %243 = vector.shape_cast %220 : vector<32xf32> to vector<1x32xf32>
    %244 = vector.broadcast %243 : vector<1x32xf32> to vector<8x32xf32>
    %245 = arith.mulf %242, %244 : vector<8x32xf32>
    %246 = vector.shape_cast %222 : vector<32xf32> to vector<1x32xf32>
    %247 = vector.broadcast %246 : vector<1x32xf32> to vector<8x32xf32>
    %248 = arith.addf %245, %247 : vector<8x32xf32>
    %c1_106 = arith.constant 1 : index
    %c0_107 = arith.constant 0 : index
    %c0_108 = arith.constant 0 : index
    %249 = vector.load %arg5[%c1_106, %c0_107, %c0_108] : memref<2x32x96xf32, #tpu.memory_space<vmem>>, vector<1x32x96xf32>
    %250 = vector.shape_cast %249 : vector<1x32x96xf32> to vector<32x96xf32>
    %cst_109 = arith.constant dense<0.000000e+00> : vector<8x96xf32>
    %251 = tpu.matmul %248, %250, %cst_109 {dimension_numbers = #tpu.dot_dimension_numbers<[1], [0], [0], [1], [0, 0, 1, 1], [], []>} : vector<8x32xf32>, vector<32x96xf32>, vector<8x96xf32> -> vector<8x96xf32>
    %252 = vector.extract_strided_slice %251 {offsets = [0, 0], sizes = [8, 32], strides = [1, 1]} : vector<8x96xf32> to vector<8x32xf32>
    %253 = vector.extract_strided_slice %251 {offsets = [0, 32], sizes = [8, 32], strides = [1, 1]} : vector<8x96xf32> to vector<8x32xf32>
    %254 = vector.extract_strided_slice %251 {offsets = [0, 64], sizes = [8, 32], strides = [1, 1]} : vector<8x96xf32> to vector<8x32xf32>
    %c1_110 = arith.constant 1 : index
    %c0_111 = arith.constant 0 : index
    %c0_112 = arith.constant 0 : index
    %255 = vector.load %arg6[%c1_110, %c0_111, %c0_112] : memref<2x32x32xf32, #tpu.memory_space<vmem>>, vector<1x32x32xf32>
    %256 = vector.shape_cast %255 : vector<1x32x32xf32> to vector<32x32xf32>
    %257 = vector.extract_strided_slice %252 {offsets = [0, 0], sizes = [8, 16], strides = [1, 1]} : vector<8x32xf32> to vector<8x16xf32>
    %258 = vector.extract_strided_slice %253 {offsets = [0, 0], sizes = [8, 16], strides = [1, 1]} : vector<8x32xf32> to vector<8x16xf32>
    %259 = vector.extract_strided_slice %254 {offsets = [0, 0], sizes = [8, 16], strides = [1, 1]} : vector<8x32xf32> to vector<8x16xf32>
    %cst_113 = arith.constant dense<0.000000e+00> : vector<8x8xf32>
    %260 = tpu.matmul %257, %258, %cst_113 {dimension_numbers = #tpu.dot_dimension_numbers<[1], [1], [0], [0], [0, 0, 1, 0], [], []>} : vector<8x16xf32>, vector<8x16xf32>, vector<8x8xf32> -> vector<8x8xf32>
    %cst_114 = arith.constant 2.500000e-01 : f32
    %261 = vector.broadcast %cst_114 : f32 to vector<8x8xf32>
    %262 = arith.mulf %260, %261 : vector<8x8xf32>
    %cst_115 = arith.constant dense<0xFF800000> : vector<8xf32>
    %263 = vector.multi_reduction <maximumf>, %262, %cst_115 [1] : vector<8x8xf32> to vector<8xf32>
    %264 = vector.shape_cast %263 : vector<8xf32> to vector<8x1xf32>
    %265 = vector.broadcast %264 : vector<8x1xf32> to vector<8x8xf32>
    %266 = arith.subf %262, %265 : vector<8x8xf32>
    %267 = math.exp %266 : vector<8x8xf32>
    %cst_116 = arith.constant dense<0.000000e+00> : vector<8xf32>
    %268 = vector.multi_reduction <add>, %267, %cst_116 [1] : vector<8x8xf32> to vector<8xf32>
    %269 = vector.shape_cast %268 : vector<8xf32> to vector<8x1xf32>
    %270 = vector.broadcast %269 : vector<8x1xf32> to vector<8x8xf32>
    %271 = arith.divf %267, %270 : vector<8x8xf32>
    %cst_117 = arith.constant dense<0.000000e+00> : vector<8x16xf32>
    %272 = tpu.matmul %271, %259, %cst_117 {dimension_numbers = #tpu.dot_dimension_numbers<[1], [0], [0], [1], [0, 0, 1, 1], [], []>} : vector<8x8xf32>, vector<8x16xf32>, vector<8x16xf32> -> vector<8x16xf32>
    %273 = vector.extract_strided_slice %252 {offsets = [0, 16], sizes = [8, 16], strides = [1, 1]} : vector<8x32xf32> to vector<8x16xf32>
    %274 = vector.extract_strided_slice %253 {offsets = [0, 16], sizes = [8, 16], strides = [1, 1]} : vector<8x32xf32> to vector<8x16xf32>
    %275 = vector.extract_strided_slice %254 {offsets = [0, 16], sizes = [8, 16], strides = [1, 1]} : vector<8x32xf32> to vector<8x16xf32>
    %cst_118 = arith.constant dense<0.000000e+00> : vector<8x8xf32>
    %276 = tpu.matmul %273, %274, %cst_118 {dimension_numbers = #tpu.dot_dimension_numbers<[1], [1], [0], [0], [0, 0, 1, 0], [], []>} : vector<8x16xf32>, vector<8x16xf32>, vector<8x8xf32> -> vector<8x8xf32>
    %cst_119 = arith.constant 2.500000e-01 : f32
    %277 = vector.broadcast %cst_119 : f32 to vector<8x8xf32>
    %278 = arith.mulf %276, %277 : vector<8x8xf32>
    %cst_120 = arith.constant dense<0xFF800000> : vector<8xf32>
    %279 = vector.multi_reduction <maximumf>, %278, %cst_120 [1] : vector<8x8xf32> to vector<8xf32>
    %280 = vector.shape_cast %279 : vector<8xf32> to vector<8x1xf32>
    %281 = vector.broadcast %280 : vector<8x1xf32> to vector<8x8xf32>
    %282 = arith.subf %278, %281 : vector<8x8xf32>
    %283 = math.exp %282 : vector<8x8xf32>
    %cst_121 = arith.constant dense<0.000000e+00> : vector<8xf32>
    %284 = vector.multi_reduction <add>, %283, %cst_121 [1] : vector<8x8xf32> to vector<8xf32>
    %285 = vector.shape_cast %284 : vector<8xf32> to vector<8x1xf32>
    %286 = vector.broadcast %285 : vector<8x1xf32> to vector<8x8xf32>
    %287 = arith.divf %283, %286 : vector<8x8xf32>
    %cst_122 = arith.constant dense<0.000000e+00> : vector<8x16xf32>
    %288 = tpu.matmul %287, %275, %cst_122 {dimension_numbers = #tpu.dot_dimension_numbers<[1], [0], [0], [1], [0, 0, 1, 1], [], []>} : vector<8x8xf32>, vector<8x16xf32>, vector<8x16xf32> -> vector<8x16xf32>
    %289 = tpu.concatenate %272, %288 in 1 : vector<8x16xf32>, vector<8x16xf32> -> vector<8x32xf32>
    %cst_123 = arith.constant dense<0.000000e+00> : vector<8x32xf32>
    %290 = tpu.matmul %289, %256, %cst_123 {dimension_numbers = #tpu.dot_dimension_numbers<[1], [0], [0], [1], [0, 0, 1, 1], [], []>} : vector<8x32xf32>, vector<32x32xf32>, vector<8x32xf32> -> vector<8x32xf32>
    %c1_124 = arith.constant 1 : index
    %c2_125 = arith.constant 2 : index
    %c0_126 = arith.constant 0 : index
    %291 = vector.load %arg3[%c1_124, %c2_125, %c0_126] : memref<2x9x32xf32, #tpu.memory_space<vmem>>, vector<1x1x32xf32>
    %292 = vector.shape_cast %291 : vector<1x1x32xf32> to vector<32xf32>
    %293 = vector.shape_cast %292 : vector<32xf32> to vector<1x32xf32>
    %294 = vector.broadcast %293 : vector<1x32xf32> to vector<8x32xf32>
    %295 = arith.addf %290, %294 : vector<8x32xf32>
    %296 = arith.addf %218, %295 : vector<8x32xf32>
    %c1_127 = arith.constant 1 : index
    %c3_128 = arith.constant 3 : index
    %c0_129 = arith.constant 0 : index
    %297 = vector.load %arg3[%c1_127, %c3_128, %c0_129] : memref<2x9x32xf32, #tpu.memory_space<vmem>>, vector<1x1x32xf32>
    %298 = vector.shape_cast %297 : vector<1x1x32xf32> to vector<32xf32>
    %c1_130 = arith.constant 1 : index
    %c4_131 = arith.constant 4 : index
    %c0_132 = arith.constant 0 : index
    %299 = vector.load %arg3[%c1_130, %c4_131, %c0_132] : memref<2x9x32xf32, #tpu.memory_space<vmem>>, vector<1x1x32xf32>
    %300 = vector.shape_cast %299 : vector<1x1x32xf32> to vector<32xf32>
    %cst_133 = arith.constant dense<0.000000e+00> : vector<8xf32>
    %301 = vector.multi_reduction <add>, %296, %cst_133 [1] : vector<8x32xf32> to vector<8xf32>
    %302 = vector.shape_cast %301 : vector<8xf32> to vector<8x1xf32>
    %cst_134 = arith.constant 3.200000e+01 : f32
    %303 = vector.broadcast %cst_134 : f32 to vector<8x1xf32>
    %304 = arith.divf %302, %303 : vector<8x1xf32>
    %305 = arith.mulf %296, %296 : vector<8x32xf32>
    %cst_135 = arith.constant dense<0.000000e+00> : vector<8xf32>
    %306 = vector.multi_reduction <add>, %305, %cst_135 [1] : vector<8x32xf32> to vector<8xf32>
    %307 = vector.shape_cast %306 : vector<8xf32> to vector<8x1xf32>
    %cst_136 = arith.constant 3.200000e+01 : f32
    %308 = vector.broadcast %cst_136 : f32 to vector<8x1xf32>
    %309 = arith.divf %307, %308 : vector<8x1xf32>
    %310 = arith.mulf %304, %304 : vector<8x1xf32>
    %311 = arith.subf %309, %310 : vector<8x1xf32>
    %cst_137 = arith.constant 0.000000e+00 : f32
    %312 = vector.broadcast %cst_137 : f32 to vector<8x1xf32>
    %313 = arith.maximumf %311, %312 : vector<8x1xf32>
    %314 = vector.broadcast %304 : vector<8x1xf32> to vector<8x32xf32>
    %315 = arith.subf %296, %314 : vector<8x32xf32>
    %cst_138 = arith.constant 9.99999974E-6 : f32
    %316 = vector.broadcast %cst_138 : f32 to vector<8x1xf32>
    %317 = arith.addf %313, %316 : vector<8x1xf32>
    %318 = math.rsqrt %317 : vector<8x1xf32>
    %319 = vector.broadcast %318 : vector<8x1xf32> to vector<8x32xf32>
    %320 = arith.mulf %315, %319 : vector<8x32xf32>
    %321 = vector.shape_cast %298 : vector<32xf32> to vector<1x32xf32>
    %322 = vector.broadcast %321 : vector<1x32xf32> to vector<8x32xf32>
    %323 = arith.mulf %320, %322 : vector<8x32xf32>
    %324 = vector.shape_cast %300 : vector<32xf32> to vector<1x32xf32>
    %325 = vector.broadcast %324 : vector<1x32xf32> to vector<8x32xf32>
    %326 = arith.addf %323, %325 : vector<8x32xf32>
    %c1_139 = arith.constant 1 : index
    %c0_140 = arith.constant 0 : index
    %c0_141 = arith.constant 0 : index
    %327 = vector.load %arg7[%c1_139, %c0_140, %c0_141] : memref<2x32x32xf32, #tpu.memory_space<vmem>>, vector<1x32x32xf32>
    %328 = vector.shape_cast %327 : vector<1x32x32xf32> to vector<32x32xf32>
    %cst_142 = arith.constant dense<0.000000e+00> : vector<8x32xf32>
    %329 = tpu.matmul %326, %328, %cst_142 {dimension_numbers = #tpu.dot_dimension_numbers<[1], [0], [0], [1], [0, 0, 1, 1], [], []>} : vector<8x32xf32>, vector<32x32xf32>, vector<8x32xf32> -> vector<8x32xf32>
    %330 = vector.extract_strided_slice %5 {offsets = [0, 64], sizes = [8, 64], strides = [1, 1]} : vector<8x128xf32> to vector<8x64xf32>
    %331 = vector.extract_strided_slice %330 {offsets = [0, 0], sizes = [8, 32], strides = [1, 1]} : vector<8x64xf32> to vector<8x32xf32>
    %332 = vector.extract_strided_slice %330 {offsets = [0, 32], sizes = [8, 32], strides = [1, 1]} : vector<8x64xf32> to vector<8x32xf32>
    %c1_143 = arith.constant 1 : index
    %c0_144 = arith.constant 0 : index
    %c0_145 = arith.constant 0 : index
    %333 = vector.load %arg9[%c1_143, %c0_144, %c0_145] : memref<2x32x32xf32, #tpu.memory_space<vmem>>, vector<1x32x32xf32>
    %334 = vector.shape_cast %333 : vector<1x32x32xf32> to vector<32x32xf32>
    %335 = vector.extract_strided_slice %329 {offsets = [0, 0], sizes = [8, 16], strides = [1, 1]} : vector<8x32xf32> to vector<8x16xf32>
    %336 = vector.extract_strided_slice %331 {offsets = [0, 0], sizes = [8, 16], strides = [1, 1]} : vector<8x32xf32> to vector<8x16xf32>
    %337 = vector.extract_strided_slice %332 {offsets = [0, 0], sizes = [8, 16], strides = [1, 1]} : vector<8x32xf32> to vector<8x16xf32>
    %cst_146 = arith.constant dense<0.000000e+00> : vector<8x8xf32>
    %338 = tpu.matmul %335, %336, %cst_146 {dimension_numbers = #tpu.dot_dimension_numbers<[1], [1], [0], [0], [0, 0, 1, 0], [], []>} : vector<8x16xf32>, vector<8x16xf32>, vector<8x8xf32> -> vector<8x8xf32>
    %cst_147 = arith.constant 2.500000e-01 : f32
    %339 = vector.broadcast %cst_147 : f32 to vector<8x8xf32>
    %340 = arith.mulf %338, %339 : vector<8x8xf32>
    %cst_148 = arith.constant dense<0xFF800000> : vector<8xf32>
    %341 = vector.multi_reduction <maximumf>, %340, %cst_148 [1] : vector<8x8xf32> to vector<8xf32>
    %342 = vector.shape_cast %341 : vector<8xf32> to vector<8x1xf32>
    %343 = vector.broadcast %342 : vector<8x1xf32> to vector<8x8xf32>
    %344 = arith.subf %340, %343 : vector<8x8xf32>
    %345 = math.exp %344 : vector<8x8xf32>
    %cst_149 = arith.constant dense<0.000000e+00> : vector<8xf32>
    %346 = vector.multi_reduction <add>, %345, %cst_149 [1] : vector<8x8xf32> to vector<8xf32>
    %347 = vector.shape_cast %346 : vector<8xf32> to vector<8x1xf32>
    %348 = vector.broadcast %347 : vector<8x1xf32> to vector<8x8xf32>
    %349 = arith.divf %345, %348 : vector<8x8xf32>
    %cst_150 = arith.constant dense<0.000000e+00> : vector<8x16xf32>
    %350 = tpu.matmul %349, %337, %cst_150 {dimension_numbers = #tpu.dot_dimension_numbers<[1], [0], [0], [1], [0, 0, 1, 1], [], []>} : vector<8x8xf32>, vector<8x16xf32>, vector<8x16xf32> -> vector<8x16xf32>
    %351 = vector.extract_strided_slice %329 {offsets = [0, 16], sizes = [8, 16], strides = [1, 1]} : vector<8x32xf32> to vector<8x16xf32>
    %352 = vector.extract_strided_slice %331 {offsets = [0, 16], sizes = [8, 16], strides = [1, 1]} : vector<8x32xf32> to vector<8x16xf32>
    %353 = vector.extract_strided_slice %332 {offsets = [0, 16], sizes = [8, 16], strides = [1, 1]} : vector<8x32xf32> to vector<8x16xf32>
    %cst_151 = arith.constant dense<0.000000e+00> : vector<8x8xf32>
    %354 = tpu.matmul %351, %352, %cst_151 {dimension_numbers = #tpu.dot_dimension_numbers<[1], [1], [0], [0], [0, 0, 1, 0], [], []>} : vector<8x16xf32>, vector<8x16xf32>, vector<8x8xf32> -> vector<8x8xf32>
    %cst_152 = arith.constant 2.500000e-01 : f32
    %355 = vector.broadcast %cst_152 : f32 to vector<8x8xf32>
    %356 = arith.mulf %354, %355 : vector<8x8xf32>
    %cst_153 = arith.constant dense<0xFF800000> : vector<8xf32>
    %357 = vector.multi_reduction <maximumf>, %356, %cst_153 [1] : vector<8x8xf32> to vector<8xf32>
    %358 = vector.shape_cast %357 : vector<8xf32> to vector<8x1xf32>
    %359 = vector.broadcast %358 : vector<8x1xf32> to vector<8x8xf32>
    %360 = arith.subf %356, %359 : vector<8x8xf32>
    %361 = math.exp %360 : vector<8x8xf32>
    %cst_154 = arith.constant dense<0.000000e+00> : vector<8xf32>
    %362 = vector.multi_reduction <add>, %361, %cst_154 [1] : vector<8x8xf32> to vector<8xf32>
    %363 = vector.shape_cast %362 : vector<8xf32> to vector<8x1xf32>
    %364 = vector.broadcast %363 : vector<8x1xf32> to vector<8x8xf32>
    %365 = arith.divf %361, %364 : vector<8x8xf32>
    %cst_155 = arith.constant dense<0.000000e+00> : vector<8x16xf32>
    %366 = tpu.matmul %365, %353, %cst_155 {dimension_numbers = #tpu.dot_dimension_numbers<[1], [0], [0], [1], [0, 0, 1, 1], [], []>} : vector<8x8xf32>, vector<8x16xf32>, vector<8x16xf32> -> vector<8x16xf32>
    %367 = tpu.concatenate %350, %366 in 1 : vector<8x16xf32>, vector<8x16xf32> -> vector<8x32xf32>
    %cst_156 = arith.constant dense<0.000000e+00> : vector<8x32xf32>
    %368 = tpu.matmul %367, %334, %cst_156 {dimension_numbers = #tpu.dot_dimension_numbers<[1], [0], [0], [1], [0, 0, 1, 1], [], []>} : vector<8x32xf32>, vector<32x32xf32>, vector<8x32xf32> -> vector<8x32xf32>
    %c1_157 = arith.constant 1 : index
    %c5_158 = arith.constant 5 : index
    %c0_159 = arith.constant 0 : index
    %369 = vector.load %arg3[%c1_157, %c5_158, %c0_159] : memref<2x9x32xf32, #tpu.memory_space<vmem>>, vector<1x1x32xf32>
    %370 = vector.shape_cast %369 : vector<1x1x32xf32> to vector<32xf32>
    %371 = vector.shape_cast %370 : vector<32xf32> to vector<1x32xf32>
    %372 = vector.broadcast %371 : vector<1x32xf32> to vector<8x32xf32>
    %373 = arith.addf %368, %372 : vector<8x32xf32>
    %374 = arith.addf %296, %373 : vector<8x32xf32>
    %c1_160 = arith.constant 1 : index
    %c6_161 = arith.constant 6 : index
    %c0_162 = arith.constant 0 : index
    %375 = vector.load %arg3[%c1_160, %c6_161, %c0_162] : memref<2x9x32xf32, #tpu.memory_space<vmem>>, vector<1x1x32xf32>
    %376 = vector.shape_cast %375 : vector<1x1x32xf32> to vector<32xf32>
    %c1_163 = arith.constant 1 : index
    %c7_164 = arith.constant 7 : index
    %c0_165 = arith.constant 0 : index
    %377 = vector.load %arg3[%c1_163, %c7_164, %c0_165] : memref<2x9x32xf32, #tpu.memory_space<vmem>>, vector<1x1x32xf32>
    %378 = vector.shape_cast %377 : vector<1x1x32xf32> to vector<32xf32>
    %cst_166 = arith.constant dense<0.000000e+00> : vector<8xf32>
    %379 = vector.multi_reduction <add>, %374, %cst_166 [1] : vector<8x32xf32> to vector<8xf32>
    %380 = vector.shape_cast %379 : vector<8xf32> to vector<8x1xf32>
    %cst_167 = arith.constant 3.200000e+01 : f32
    %381 = vector.broadcast %cst_167 : f32 to vector<8x1xf32>
    %382 = arith.divf %380, %381 : vector<8x1xf32>
    %383 = arith.mulf %374, %374 : vector<8x32xf32>
    %cst_168 = arith.constant dense<0.000000e+00> : vector<8xf32>
    %384 = vector.multi_reduction <add>, %383, %cst_168 [1] : vector<8x32xf32> to vector<8xf32>
    %385 = vector.shape_cast %384 : vector<8xf32> to vector<8x1xf32>
    %cst_169 = arith.constant 3.200000e+01 : f32
    %386 = vector.broadcast %cst_169 : f32 to vector<8x1xf32>
    %387 = arith.divf %385, %386 : vector<8x1xf32>
    %388 = arith.mulf %382, %382 : vector<8x1xf32>
    %389 = arith.subf %387, %388 : vector<8x1xf32>
    %cst_170 = arith.constant 0.000000e+00 : f32
    %390 = vector.broadcast %cst_170 : f32 to vector<8x1xf32>
    %391 = arith.maximumf %389, %390 : vector<8x1xf32>
    %392 = vector.broadcast %382 : vector<8x1xf32> to vector<8x32xf32>
    %393 = arith.subf %374, %392 : vector<8x32xf32>
    %cst_171 = arith.constant 9.99999974E-6 : f32
    %394 = vector.broadcast %cst_171 : f32 to vector<8x1xf32>
    %395 = arith.addf %391, %394 : vector<8x1xf32>
    %396 = math.rsqrt %395 : vector<8x1xf32>
    %397 = vector.broadcast %396 : vector<8x1xf32> to vector<8x32xf32>
    %398 = arith.mulf %393, %397 : vector<8x32xf32>
    %399 = vector.shape_cast %376 : vector<32xf32> to vector<1x32xf32>
    %400 = vector.broadcast %399 : vector<1x32xf32> to vector<8x32xf32>
    %401 = arith.mulf %398, %400 : vector<8x32xf32>
    %402 = vector.shape_cast %378 : vector<32xf32> to vector<1x32xf32>
    %403 = vector.broadcast %402 : vector<1x32xf32> to vector<8x32xf32>
    %404 = arith.addf %401, %403 : vector<8x32xf32>
    %c1_172 = arith.constant 1 : index
    %c0_173 = arith.constant 0 : index
    %c0_174 = arith.constant 0 : index
    %405 = vector.load %arg10[%c1_172, %c0_173, %c0_174] : memref<2x32x64xf32, #tpu.memory_space<vmem>>, vector<1x32x64xf32>
    %406 = vector.shape_cast %405 : vector<1x32x64xf32> to vector<32x64xf32>
    %cst_175 = arith.constant dense<0.000000e+00> : vector<8x64xf32>
    %407 = tpu.matmul %404, %406, %cst_175 {dimension_numbers = #tpu.dot_dimension_numbers<[1], [0], [0], [1], [0, 0, 1, 1], [], []>} : vector<8x32xf32>, vector<32x64xf32>, vector<8x64xf32> -> vector<8x64xf32>
    %c1_176 = arith.constant 1 : index
    %c0_177 = arith.constant 0 : index
    %408 = vector.load %arg4[%c1_176, %c0_177] : memref<2x64xf32, #tpu.memory_space<vmem>>, vector<1x64xf32>
    %409 = vector.shape_cast %408 : vector<1x64xf32> to vector<64xf32>
    %410 = vector.shape_cast %409 : vector<64xf32> to vector<1x64xf32>
    %411 = vector.broadcast %410 : vector<1x64xf32> to vector<8x64xf32>
    %412 = arith.addf %407, %411 : vector<8x64xf32>
    %cst_178 = arith.constant 5.000000e-01 : f32
    %413 = vector.broadcast %cst_178 : f32 to vector<8x64xf32>
    %414 = arith.mulf %413, %412 : vector<8x64xf32>
    %cst_179 = arith.constant 2.000000e+00 : f32
    %415 = math.sqrt %cst_179 : f32
    %cst_180 = arith.constant 1.000000e+00 : f32
    %416 = arith.divf %cst_180, %415 : f32
    %417 = vector.broadcast %416 : f32 to vector<8x64xf32>
    %418 = arith.mulf %412, %417 : vector<8x64xf32>
    %419 = math.erf %418 : vector<8x64xf32>
    %cst_181 = arith.constant 1.000000e+00 : f32
    %420 = vector.broadcast %cst_181 : f32 to vector<8x64xf32>
    %421 = arith.addf %420, %419 : vector<8x64xf32>
    %422 = arith.mulf %414, %421 : vector<8x64xf32>
    %c1_182 = arith.constant 1 : index
    %c0_183 = arith.constant 0 : index
    %c0_184 = arith.constant 0 : index
    %423 = vector.load %arg11[%c1_182, %c0_183, %c0_184] : memref<2x64x32xf32, #tpu.memory_space<vmem>>, vector<1x64x32xf32>
    %424 = vector.shape_cast %423 : vector<1x64x32xf32> to vector<64x32xf32>
    %cst_185 = arith.constant dense<0.000000e+00> : vector<8x32xf32>
    %425 = tpu.matmul %422, %424, %cst_185 {dimension_numbers = #tpu.dot_dimension_numbers<[1], [0], [0], [1], [0, 0, 1, 1], [], []>} : vector<8x64xf32>, vector<64x32xf32>, vector<8x32xf32> -> vector<8x32xf32>
    %c1_186 = arith.constant 1 : index
    %c8_187 = arith.constant 8 : index
    %c0_188 = arith.constant 0 : index
    %426 = vector.load %arg3[%c1_186, %c8_187, %c0_188] : memref<2x9x32xf32, #tpu.memory_space<vmem>>, vector<1x1x32xf32>
    %427 = vector.shape_cast %426 : vector<1x1x32xf32> to vector<32xf32>
    %428 = vector.shape_cast %427 : vector<32xf32> to vector<1x32xf32>
    %429 = vector.broadcast %428 : vector<1x32xf32> to vector<8x32xf32>
    %430 = arith.addf %425, %429 : vector<8x32xf32>
    %431 = arith.addf %374, %430 : vector<8x32xf32>
    %c0_189 = arith.constant 0 : index
    %c0_190 = arith.constant 0 : index
    %c0_191 = arith.constant 0 : index
    %432 = vector.load %arg12[%c0_189, %c0_190, %c0_191] : memref<1x8x32xf32, #tpu.memory_space<vmem>>, vector<1x8x32xf32>
    %433 = vector.shape_cast %432 : vector<1x8x32xf32> to vector<8x32xf32>
    %434 = vector.shape_cast %431 : vector<8x32xf32> to vector<1x8x32xf32>
    tpu.vector_store %arg12[%c0_189, %c0_190, %c0_191], %434 {strides = array<i32>} : memref<1x8x32xf32, #tpu.memory_space<vmem>>, vector<1x8x32xf32>,
    return
  }
  func.func @transform_0(%arg0: i32) -> (i32, i32, i32) {
    %c0_i32 = arith.constant 0 : i32
    %c0_i32_0 = arith.constant 0 : i32
    %c0_i32_1 = arith.constant 0 : i32
    return %arg0, %c0_i32, %c0_i32_0 : i32, i32, i32
  }
  func.func @transform_1(%arg0: i32) -> (i32, i32, i32) {
    %c0_i32 = arith.constant 0 : i32
    %c0_i32_0 = arith.constant 0 : i32
    %c0_i32_1 = arith.constant 0 : i32
    return %arg0, %c0_i32, %c0_i32_0 : i32, i32, i32
  }
  func.func @transform_2(%arg0: i32) -> (i32, i32, i32) {
    %c0_i32 = arith.constant 0 : i32
    %c0_i32_0 = arith.constant 0 : i32
    %c0_i32_1 = arith.constant 0 : i32
    %c0_i32_2 = arith.constant 0 : i32
    return %c0_i32, %c0_i32_0, %c0_i32_1 : i32, i32, i32
  }
  func.func @transform_3(%arg0: i32) -> (i32, i32) {
    %c0_i32 = arith.constant 0 : i32
    %c0_i32_0 = arith.constant 0 : i32
    %c0_i32_1 = arith.constant 0 : i32
    return %c0_i32, %c0_i32_0 : i32, i32
  }
  func.func @transform_4(%arg0: i32) -> (i32, i32, i32) {
    %c0_i32 = arith.constant 0 : i32
    %c0_i32_0 = arith.constant 0 : i32
    %c0_i32_1 = arith.constant 0 : i32
    %c0_i32_2 = arith.constant 0 : i32
    return %c0_i32, %c0_i32_0, %c0_i32_1 : i32, i32, i32
  }
  func.func @transform_5(%arg0: i32) -> (i32, i32, i32) {
    %c0_i32 = arith.constant 0 : i32
    %c0_i32_0 = arith.constant 0 : i32
    %c0_i32_1 = arith.constant 0 : i32
    %c0_i32_2 = arith.constant 0 : i32
    return %c0_i32, %c0_i32_0, %c0_i32_1 : i32, i32, i32
  }
  func.func @transform_6(%arg0: i32) -> (i32, i32, i32) {
    %c0_i32 = arith.constant 0 : i32
    %c0_i32_0 = arith.constant 0 : i32
    %c0_i32_1 = arith.constant 0 : i32
    %c0_i32_2 = arith.constant 0 : i32
    return %c0_i32, %c0_i32_0, %c0_i32_1 : i32, i32, i32
  }
  func.func @transform_7(%arg0: i32) -> (i32, i32) {
    %c0_i32 = arith.constant 0 : i32
    %c0_i32_0 = arith.constant 0 : i32
    %c0_i32_1 = arith.constant 0 : i32
    return %c0_i32, %c0_i32_0 : i32, i32
  }
  func.func @transform_8(%arg0: i32) -> (i32, i32, i32) {
    %c0_i32 = arith.constant 0 : i32
    %c0_i32_0 = arith.constant 0 : i32
    %c0_i32_1 = arith.constant 0 : i32
    %c0_i32_2 = arith.constant 0 : i32
    return %c0_i32, %c0_i32_0, %c0_i32_1 : i32, i32, i32
  }
  func.func @transform_9(%arg0: i32) -> (i32, i32, i32) {
    %c0_i32 = arith.constant 0 : i32
    %c0_i32_0 = arith.constant 0 : i32
    %c0_i32_1 = arith.constant 0 : i32
    %c0_i32_2 = arith.constant 0 : i32
    return %c0_i32, %c0_i32_0, %c0_i32_1 : i32, i32, i32
  }
  func.func @transform_10(%arg0: i32) -> (i32, i32, i32) {
    %c0_i32 = arith.constant 0 : i32
    %c0_i32_0 = arith.constant 0 : i32
    %c0_i32_1 = arith.constant 0 : i32
    %c0_i32_2 = arith.constant 0 : i32
    return %c0_i32, %c0_i32_0, %c0_i32_1 : i32, i32, i32
  }
  func.func @transform_11(%arg0: i32) -> (i32, i32, i32) {
    %c0_i32 = arith.constant 0 : i32
    %c0_i32_0 = arith.constant 0 : i32
    %c0_i32_1 = arith.constant 0 : i32
    return %arg0, %c0_i32, %c0_i32_0 : i32, i32, i32
  }
}

</mosaic_0001>

<bundles_post_ra>
// kernel: transformer_cross_attn.1
= control target key start
LH: loop header
LB: loop body
LE: loop exit
PB: predicated region body
PF: predicated region fallthrough
CT: control target
= control target key end

     0   :  { %s4925_s0 = inlined_call_operand.hbm [shape: f32[2,8,32], index: 0, kind: input, shape index: {}]   ;;  %s4926_s1 = inlined_call_operand.hbm [shape: f32[2,8,32], index: 1, kind: input, shape index: {}]   ;;  %s4927_s2 = inlined_call_operand.vmem [shape: f32[2,9,32], index: 2, kind: input, shape index: {}]   ;;  %s4928_s3 = inlined_call_operand.vmem [shape: f32[2,64], index: 3, kind: input, shape index: {}]   ;;  %s4929_s4 = inlined_call_operand.vmem [shape: f32[2,32,96], index: 4, kind: input, shape index: {}]   ;;  %s4930_s5 = inlined_call_operand.vmem [shape: f32[2,32,32], index: 5, kind: input, shape index: {}]   ;;  %s4931_s6 = inlined_call_operand.vmem [shape: f32[2,32,32], index: 6, kind: input, shape index: {}]   ;;  %s4932_s7 = inlined_call_operand.hbm [shape: f32[32,128], index: 7, kind: input, shape index: {}]   ;;  %s4933_s8 = inlined_call_operand.hbm [shape: f32[2,32,32], index: 8, kind: input, shape index: {}]   ;;  %s4934_s9 = inlined_call_operand.hbm [shape: f32[2,32,64], index: 9, kind: input, shape index: {}]   ;;  %s4935_s10 = inlined_call_operand.vmem [shape: f32[2,64,32], index: 10, kind: input, shape index: {}]   ;;  %s4936_s11 = inlined_call_operand.hbm [shape: f32[2,8,32], index: 11, kind: output, shape index: {}]  }
   0x1   :  { %4946 = sst [smem:[#allocation19_spill]] %s4928_s3 }
   0x2   :  { %4947 = sst [smem:[#allocation20_spill]] %s4932_s7 }
   0x3   :  { %4948 = sst [smem:[#allocation21_spill]] %s4933_s8 }
   0x4   :  { %4949 = sst [smem:[#allocation22_spill]] %s4934_s9 }
   0x5   :  { %4950 = sst [smem:[#allocation23_spill]] %s4935_s10 }
   0x6   :  { %4951 = sst [smem:[#allocation24_spill]] %s4936_s11 }
   0x7   :  { %16 = vsyncpa [#allocation3], 0 }
   0x8   :  { %18 = vsyncpa [#allocation3 + $0x1], 0 }
   0x9   :  { %19 = vsyncpa [#allocation6], 0 }
   0xa   :  { %21 = vsyncpa [#allocation6 + $0x1], 0 }
   0xb   :  { %22 = vsyncpa [#allocation9], 0 }
   0xc   :  { %23 = vsyncpa [#allocation4], 0 }
   0xd   :  { %25 = vsyncpa [#allocation4 + $0x1], 0  ;;  %s4193_s17 = smov 0   ;;  %s4195_s18 = smov 0  }
   0xe   :  { %s4197_s19 = smov 0   ;;  %s4199_s20 = smov 0  }
   0xf LB: > { %4952 = sst [smem:[#allocation17_spill]] %s4101_s17  ;;  %s4214_s21 = sadd.s32 4294967295, %s4113_s20   ;;  %s4113_s20 = sphi %s4199_s20, %s4982_s20   ;;  %s4109_s19 = sphi %s4197_s19, %s4981_s19   ;;  %s4105_s18 = sphi %s4195_s18, %s4980_s18   ;;  %s4101_s17 = sphi %s4193_s17, %s4979_s17  }
  0x10   : > { %s3208_s22 = sadd.s32 4294967294, %s4113_s20   ;;  %p51_p0 = scmp.ne.s32.totalorder %s4105_s18, %s4101_s17 }
  0x11   : > { %p4938_p1 = scmp.eq.s32.totalorder %s4214_s21, 0  ;;  %p296_p3 = scmp.eq.s32.totalorder %s3208_s22, 1 }
  0x12   : > { %p3209_p5 = scmp.ge.s32.totalorder %s4113_s20, 1  ;;  %p303_p7 = scmp.lt.s32.totalorder %s4113_s20, 3 }
  0x13   : > { %p4223_p4 = por %p4938_p1, %p51_p0  ;;  %p4228_p6 = por %p296_p3, %p51_p0 }
  0x14   : > { %p4233_p8 = pnand %p3209_p5, %p303_p7  ;;  %s4115_s26 = smov [#allocation7]  }
  0x15   : > { %s4953_s23 = scalar_select %p4223_p4, 1, 0 }
  0x16   : > { %s4954_s24 = scalar_select %p4228_p6, 1, 0 }
  0x17   : > { %s4956_s25 = scalar_select %p4233_p8, 1, 0 }
  0x18   : > { %4955 = sst [smem:[#allocation18_spill]] %s4954_s24  ;;  %s330_s27 = sshll.u32 %s4115_s26, 4  ;;  %s4237_s27 = int_to_ptr.vmem [resolvable:$true] %s330_s27 }
  0x19   : > { %p3767_p9 = pneg %p4233_p8  ;;  %s4116_s29 = smov [#allocation8]  }
  0x1a   : > { %s343_s30 = sshll.u32 %s4116_s29, 4  ;;  %s4117_s12 = smov [#allocation10]   ;;  %s4248_s30 = int_to_ptr.vmem [resolvable:$true] %s343_s30 }
  0x1b   : > { %p4244_p11 = pnand %p3767_p9, %p4938_p1  ;;  %s4250_s13 = sshll.u32 %s4117_s12, 4  ;;  %s357_s13 = int_to_ptr.vmem [resolvable:$true] %s4250_s13 }
  0x1c   : > { %s4958_s7 = sld [smem:[#allocation20_spill]] }
  0x1d   : > { %p4260_p13 = pneg %p4244_p11 }
  0x22   : > { %s3891_s16 = scalar_lea.hbm %s4958_s7, 512 }
  0x23   : > { %p3892_p12 = scmp.ne.s32.totalorder %s4958_s7, %s3891_s16  ;;  %p3898_p5 = scmp.lt.u32.totalorder %s3891_s16, %s4958_s7 }
  0x25   : > { %p3894_p0 = pnand %p4260_p13, %p3892_p12 }
  0x27   : > { %p3895_p3 = pneg %p3894_p0 }
  0x29   : > { %p3900_p7 = pnand %p3898_p5, %p3895_p3 }
  0x2b   : > { %3903 = shalt.err (!%p3900_p7)
}
  0x2c   : > { %s3904_s14 = scalar_lea.vmem %s4237_s27, 512  ;;  %p3912_p2 = scmp.lt.s32.totalorder %s4237_s27, %s4237_s27 }
  0x2d   : > { %p3905_p9 = scmp.ne.s32.totalorder %s4237_s27, %s3904_s14  ;;  %p3913_p6 = scmp.lt.s32.totalorder %s3904_s14, %s3904_s14 }
  0x2f   : > { %p3907_p10 = pnand %p3905_p9, %p4260_p13  ;;  %p3914_p12 = por %p3913_p6, %p3912_p2 }
  0x31   : > { %p3908_p1 = pneg %p3907_p10 }
  0x33   : > { %p3915_p0 = pnand %p3914_p12, %p3908_p1 }
  0x35   : > { %3918 = shalt.err (!%p3915_p0)
}
  0x36   : > { %s4118_s15 = smov 128   ;;  %s4119_s16 = smov 8  }
  0x37   : > { %3770 = dma.hbm_to_vmem [thread:$0]  (!%p4244_p11), %s4958_s7, 512, %s4237_s27, [#allocation6], %s4118_s15, %s4118_s15, %s4119_s16  }
  0x38   : > { %s4960_s8 = sld [smem:[#allocation21_spill]] }
  0x3e   : > { %s3919_s14 = scalar_lea.hbm %s4960_s8, 1024 }
  0x3f   : > { %p3920_p1 = scmp.ne.s32.totalorder %s4960_s8, %s3919_s14  ;;  %p3926_p10 = scmp.lt.u32.totalorder %s3919_s14, %s4960_s8 }
  0x41   : > { %p3922_p2 = pnand %p3920_p1, %p4260_p13 }
  0x43   : > { %p3923_p6 = pneg %p3922_p2 }
  0x45   : > { %p3928_p3 = pnand %p3926_p10, %p3923_p6 }
  0x47   : > { %3931 = shalt.err (!%p3928_p3)
}
  0x48   : > { %s3932_s27 = scalar_lea.vmem %s4248_s30, 1024  ;;  %p3940_p12 = scmp.lt.s32.totalorder %s4248_s30, %s4248_s30 }
  0x49   : > { %p3933_p5 = scmp.ne.s32.totalorder %s4248_s30, %s3932_s27  ;;  %p3941_p0 = scmp.lt.s32.totalorder %s3932_s27, %s3932_s27 }
  0x4b   : > { %p3935_p7 = pnand %p3933_p5, %p4260_p13  ;;  %p3942_p1 = por %p3941_p0, %p3940_p12 }
  0x4d   : > { %p3936_p9 = pneg %p3935_p7 }
  0x4f   : > { %p3943_p2 = pnand %p3942_p1, %p3936_p9 }
  0x51   : > { %3946 = shalt.err (!%p3943_p2)
}
  0x52   : > { %3773 = dma.hbm_to_vmem [thread:$0]  (!%p4244_p11), %s4960_s8, 1024, %s4248_s30, [#allocation9], %s4118_s15, %s4118_s15, %s4119_s16  }
  0x53   : > { %s4961_s9 = sld [smem:[#allocation22_spill]] }
  0x59   : > { %s3947_s22 = scalar_lea.hbm %s4961_s9, 1024 }
  0x5a   : > { %p3948_p6 = scmp.ne.s32.totalorder %s4961_s9, %s3947_s22  ;;  %p3954_p5 = scmp.lt.u32.totalorder %s3947_s22, %s4961_s9 }
  0x5c   : > { %p3950_p10 = pnand %p3948_p6, %p4260_p13 }
  0x5e   : > { %p3951_p3 = pneg %p3950_p10 }
  0x60   : > { %p3956_p7 = pnand %p3954_p5, %p3951_p3 }
  0x62   : > { %3959 = shalt.err (!%p3956_p7)
}
  0x63   : > { %s3960_s27 = scalar_lea.vmem %s357_s13, 1024  ;;  %p3968_p1 = scmp.lt.s32.totalorder %s357_s13, %s357_s13 }
  0x64   : > { %p3961_p9 = scmp.ne.s32.totalorder %s357_s13, %s3960_s27  ;;  %p3969_p2 = scmp.lt.s32.totalorder %s3960_s27, %s3960_s27 }
  0x66   : > { %p3963_p12 = pnand %p3961_p9, %p4260_p13  ;;  %p3970_p4 = por %p3969_p2, %p3968_p1 }
  0x68   : > { %p3964_p0 = pneg %p3963_p12 }
  0x6a   : > { %p3971_p8 = pnand %p3970_p4, %p3964_p0 }
  0x6c   : > { %3974 = shalt.err (!%p3971_p8)
}
  0x6d   : > { %3776 = dma.hbm_to_vmem [thread:$0]  (!%p4244_p11), %s4961_s9, 1024, %s357_s13, [#allocation9], %s4118_s15, %s4118_s15, %s4119_s16  }
  0x6e   : > { %s4333_s24 = sadd.s32 1, %s4113_s20   ;;  %s38_s10 = sadd.s32 1, %s4109_s19 }
  0x6f   : > { %s35_s28 = ssub.s32 %s4113_s20, %s4333_s24  ;;  %p45_p8 = scmp.ne.s32.totalorder %s4109_s19, %s4105_s18 }
  0x70   : > { %p36_p4 = scmp.eq.s32.totalorder %s35_s28, 0  ;;  %p46_p13 = scmp.eq.s32.totalorder %s4113_s20, 0 }
  0x71   : > { %p3791_p6 = scmp.lt.s32.totalorder %s4113_s20, 2  ;;  %p4962_p3 = scmp.eq.s32.totalorder %s4214_s21, 1 }
  0x72   : > { %s4343_s11 = scalar_select %p36_p4, %s4109_s19, %s38_s10  }
  0x73   : > { %p47_p10 = por %p46_p13, %p45_p8  ;;  %p4347_p5 = por %p4962_p3, %p45_p8 }
  0x74   : > { %s373_s22 = sand.u32 1, %s4109_s19   ;;  %s3215_s26 = sshll.u32 %s4113_s20, 7 }
  0x75   : > { %s4963_s17 = scalar_select %p4347_p5, 1, 0 }
  0x76   : > { %s4353_s13 = sshll.u32 %s373_s22, 3  ;;  %s4358_s29 = scalar_lea.hbm %s4925_s0, %s3215_s26 }
  0x77   : > { %s377_s12 = scalar_lea.vmem [#allocation2], %s4353_s13  ;;  %p4361_p11 = pnand %p3791_p6, %p47_p10 }
  0x78   : > { %s384_s14 = sshll.u32 %s377_s12, 4  ;;  %s4370_s28 = scalar_lea.hbm %s4926_s1, %s3215_s26  ;;  %s4365_s14 = int_to_ptr.vmem [resolvable:$true] %s384_s14 }
  0x79   : > { %s374_s10 = scalar_lea.sflag [#allocation3], %s373_s22  ;;  %s3975_s15 = scalar_lea.hbm %s4358_s29, 128 }
  0x7a   : > { %p3976_p7 = scmp.ne.s32.totalorder %s4358_s29, %s3975_s15  ;;  %p3977_p9 = pneg %p4361_p11 }
  0x7b   : > { %s3980_s7 = scalar_lea.hbm %s4925_s0, 256  ;;  %p3981_p1 = scmp.lt.u32.totalorder %s4358_s29, %s4925_s0 }
  0x7c   : > { %p3978_p12 = pnand %p3977_p9, %p3976_p7  ;;  %p3982_p2 = scmp.lt.u32.totalorder %s3980_s7, %s3975_s15 }
  0x7d   : > { %p3984_p8 = scmp.lt.u32.totalorder %s3975_s15, %s4358_s29 }
  0x7e   : > { %p3979_p0 = pneg %p3978_p12  ;;  %p3983_p4 = por %p3982_p2, %p3981_p1 }
  0x80   : > { %p3985_p13 = por %p3984_p8, %p3983_p4 }
  0x82   : > { %p3986_p6 = pnand %p3985_p13, %p3979_p0 }
  0x84   : > { %3989 = shalt.err (!%p3986_p6)
}
  0x85   : > { %s3990_s22 = scalar_lea.vmem %s4365_s14, 128  ;;  %s4120_s26 = smov [#allocation2]  }
  0x86   : > { %p3991_p10 = scmp.ne.s32.totalorder %s4365_s14, %s3990_s22  ;;  %s3995_s30 = sshll.u32 %s4120_s26, 4  ;;  %s3996_s30 = int_to_ptr.vmem [resolvable:$false] %s3995_s30 }
  0x87   : > { %s3997_s8 = scalar_lea.vmem %s3996_s30, 256  ;;  %p3998_p12 = scmp.lt.s32.totalorder %s4365_s14, %s3996_s30 }
  0x88   : > { %p3993_p3 = pnand %p3991_p10, %p3977_p9  ;;  %p3999_p1 = scmp.lt.s32.totalorder %s3997_s8, %s3990_s22 }
  0x8a   : > { %p3994_p7 = pneg %p3993_p3  ;;  %p4000_p2 = por %p3999_p1, %p3998_p12 }
  0x8c   : > { %p4001_p4 = pnand %p4000_p2, %p3994_p7 }
  0x8e   : > { %4004 = shalt.err (!%p4001_p4)
}
  0x8f   : > { %3780 = dma.hbm_to_vmem [thread:$0]  (!%p4361_p11), %s4358_s29, 128, %s4365_s14, %s374_s10  }
  0x90   : > { %s391_s7 = sand.u32 1, %s4113_s20   ;;  %s395_s9 = scalar_lea.vmem [#allocation5], %s4353_s13 }
  0x91   : > { %s402_s3 = sshll.u32 %s395_s9, 4  ;;  %s392_s15 = scalar_lea.sflag [#allocation6], %s391_s7  ;;  %s403_s3 = int_to_ptr.vmem [resolvable:$true] %s402_s3 }
  0x92   : > { %s4005_s16 = scalar_lea.hbm %s4370_s28, 128  ;;  %s4010_s26 = scalar_lea.hbm %s4926_s1, 256 }
  0x93   : > { %p4006_p0 = scmp.ne.s32.totalorder %s4370_s28, %s4005_s16  ;;  %p4011_p6 = scmp.lt.u32.totalorder %s4370_s28, %s4926_s1 }
  0x94   : > { %p4012_p10 = scmp.lt.u32.totalorder %s4010_s26, %s4005_s16  ;;  %p4014_p7 = scmp.lt.u32.totalorder %s4005_s16, %s4370_s28 }
  0x95   : > { %p4008_p8 = pnand %p4006_p0, %p3977_p9 }
  0x96   : > { %p4013_p3 = por %p4012_p10, %p4011_p6 }
  0x97   : > { %p4009_p13 = pneg %p4008_p8 }
  0x98   : > { %p4015_p12 = por %p4014_p7, %p4013_p3 }
  0x9a   : > { %p4016_p1 = pnand %p4015_p12, %p4009_p13 }
  0x9c   : > { %4019 = shalt.err (!%p4016_p1)
}
  0x9d   : > { %s4020_s13 = scalar_lea.vmem %s403_s3, 128  ;;  %s4121_s29 = smov [#allocation5]  }
  0x9e   : > { %p4021_p2 = scmp.ne.s32.totalorder %s403_s3, %s4020_s13  ;;  %s4025_s14 = sshll.u32 %s4121_s29, 4  ;;  %s4026_s14 = int_to_ptr.vmem [resolvable:$false] %s4025_s14 }
  0x9f   : > { %s4027_s10 = scalar_lea.vmem %s4026_s14, 256  ;;  %p4028_p8 = scmp.lt.s32.totalorder %s403_s3, %s4026_s14 }
  0xa0   : > { %p4023_p4 = pnand %p4021_p2, %p3977_p9  ;;  %p4029_p5 = scmp.lt.s32.totalorder %s4027_s10, %s4020_s13 }
  0xa2   : > { %p4024_p0 = pneg %p4023_p4  ;;  %p4030_p6 = por %p4029_p5, %p4028_p8 }
  0xa4   : > { %p4031_p10 = pnand %p4030_p6, %p4024_p0 }
  0xa6   : > { %4034 = shalt.err (!%p4031_p10)
}
  0xa7   : > { %3783 = dma.hbm_to_vmem [thread:$0]  (!%p4361_p11), %s4370_s28, 128, %s403_s3, %s392_s15  }
  0xa8   : > { %p4965_p13 = scmp.ne.s32.totalorder %s4956_s25, 0 }
  0xa9   : > { %s4421_s7 = sand.u32 (!%p4965_p13), 1, %s4105_s18   ;;  %p4966_p5 = scmp.ne.s32.totalorder (!%p4965_p13), %s4953_s23, 0 }
  0xaa   : > { %411 = sbr.rel (%p4965_p13) target bundleno = 7731 (0x1e33), region = 64  ;;  %s4424_s9 = sshll.u32 (!%p4965_p13), %s4421_s7, 3 }
  0xab   : > { %s414_s16 = scalar_lea.sflag (!%p4965_p13), [#allocation3], %s4421_s7  ;;  %s417_s12 = scalar_lea.vmem (!%p4965_p13), [#allocation2], %s4424_s9 }
  0xb1   : > { %4080 = dma.done.wait (%p4966_p5), %s414_s16, 128  }
  0xb2   : > { %4082 = vsyncadd (%p4966_p5), %s414_s16, 4294967168  ;;  %s422_s25 = sand.u32 1, %s4214_s21   ;;  %s426_s28 = scalar_lea.vmem [#allocation5], %s4424_s9 }
  0xb3   : > { %s423_s27 = scalar_lea.sflag [#allocation6], %s422_s25 }
  0xb4   : > { %4084 = dma.done.wait (%p4966_p5), %s423_s27, 128  }
  0xb5   : > { %4086 = vsyncadd (%p4966_p5), %s423_s27, 4294967168  ;;  %p4967_p11 = scmp.eq.s32.totalorder %s4214_s21, 0 }
  0xb7   : > { %4088 = dma.done.wait (%p4967_p11), [#allocation6], 512   ;;  %p4968_p9 = pmov %p4967_p11 }
  0xb9   : > { %4090 = vsyncadd (%p4968_p9), [#allocation6], 4294966784  ;;  %p4969_p3 = pmov %p4968_p9 }
  0xbb   : > { %4092 = dma.done.wait (%p4969_p3), [#allocation9], 2048   ;;  %p4970_p7 = pmov %p4969_p3 }
  0xbc   : > { %vm488_vm0 = vcmask 261120   ;;  %v4446_v0 = vld [vmem:[%s417_s12] sm:$0xff]  ;;  %v4122_v7 = vmov 0.0|0.0   ;;  %v486_v8 = vld [vmem:[#allocation7 + $0x10] sm:$0xff]  ;;  %v487_v9 = vld [vmem:[#allocation7 + $0x18] sm:$0xff]  ;;  %vm4123_vm1 = vmmov 0  }
  0xbd   : > { %4094 = vsyncadd (%p4970_p7), [#allocation9], 4294965248  ;;  %v564_v1 = vsel %vm488_vm0, %v4446_v0, 0.0  ;;  %v569_v2 = vmul.f32 %v4446_v0, %v4446_v0  ;;  %v484_v4 = vld [vmem:[#allocation7] sm:$0xff]  ;;  %v485_v5 = vld [vmem:[#allocation7 + $0x8] sm:$0xff]  ;;  %3659 = vmatprep.subr.bf16.mxu1 %v4122_v7  ;;  %v3663_v10 = vpack.c.bf16 %v487_v9, %v486_v8  ;;  %v4124_v13 = vmov 0.0  }
  0xbe   : > { %565 = vadd.xlane.f32.xlu0 %v564_v1  ;;  %v3660_v6 = vpack.c.bf16 %v485_v5, %v484_v4  ;;  %v591_v11 = vld [vmem:[%s4929_s4] sm:$0xff]  ;;  %v592_v12 = vld [vmem:[%s4929_s4 + $0x8] sm:$0xff]  ;;  %3428 = vmatprep.mubr.msk.f32.mxu1 %vm4123_vm1, %v4124_v13  ;;  %v483_v14 = vld [vmem:[%s426_s28] sm:$0xff]  ;;  %s4125_s12 = smov 112   ;;  %s4126_s25 = smov 96   ;;  %vm675_vm2 = vcmask 130048  }
  0xbf   : > { %v570_v3 = vsel %vm488_vm0, %v569_v2, 0.0  ;;  %v3666_v15 = vpack.c.bf16 %v592_v12, %v591_v11  ;;  %3442 = vmatprep.subr.mxu0 %v4124_v13  ;;  %3444 = vmatprep.mubr.msk.f32.mxu0 %vm4123_vm1, %v4124_v13  ;;  %v593_v16 = vld [vmem:[%s4929_s4 + $0x10] sm:$0xff]  ;;  %v594_v17 = vld [vmem:[%s4929_s4 + $0x18] sm:$0xff]  ;;  %v3226_v29 = vld [vmem:[%s4927_s2] ss:$0 sm:$0xff]  ;;  %s4127_s27 = smov 80  }
  0xc0   : > { %3661 = vmatpush3.bf16.msra.mxu1 %v3660_v6  ;;  %v3669_v18 = vpack.c.bf16 %v594_v17, %v593_v16  ;;  %v3227_v31 = vld [vmem:[%s4927_s2 + $0x1] ss:$0 sm:$0xff]  ;;  %vm751_vm3 = vcmask 64512   ;;  %s4128_s28 = smov 48   ;;  %s4129_s23 = smov 64   ;;  %v669_v5 = vld [vmem:[%s4930_s5 + $0x8] sm:$0xff] }
  0xc1   : > { %3662 = vmatprep.subr.bf16.mxu1 %v4122_v7  ;;  %v668_v4 = vld [vmem:[%s4930_s5] sm:$0xff]  ;;  %v670_v6 = vld [vmem:[%s4930_s5 + $0x10] sm:$0xff]  ;;  %v671_v9 = vld [vmem:[%s4930_s5 + $0x18] sm:$0xff]  ;;  %s4130_s14 = smov 16   ;;  %s4971_s3 = sld [smem:[#allocation23_spill]]  ;;  %vm1740_vm4 = vcmask 523264  }
  0xc2   : > { %571 = vadd.xlane.f32.xlu0 %v570_v3  ;;  %v3672_v8 = vpack.c.bf16 %v669_v5, %v668_v4  ;;  %s4972_s10 = sld [smem:[#allocation19_spill]]  ;;  %s3312_s8 = sshll.u32 %s4214_s21, 7 }
  0xc3   : > { %s4973_s13 = sld [smem:[#allocation24_spill]]  ;;  %s3074_s16 = scalar_lea.sflag [#allocation4], %s4421_s7 }
  0xc4   : > { %3664 = vmatpush3.bf16.msra.mxu1 %v3663_v10  ;;  %v3675_v10 = vpack.c.bf16 %v671_v9, %v670_v6  ;;  %p4974_p1 = scmp.ne.s32.totalorder %s4963_s17, 0 }
  0xc5   : > { %3665 = vmatprep.subr.bf16.mxu1 %v4122_v7 }
  0xc7   : > { %3429 = vmatmul.mubr.msk.f32.vlgmr.msra.gmra.mrb[0].mxu1 %vm488_vm0, %v483_v14 }
  0xc8   : > { %3667 = vmatpush3.bf16.msra.mxu1 %v3666_v15  ;;  %3439 = vmatprep.mubr.msk.f32.mxu1 %vm4123_vm1, %v4124_v13 }
  0xc9   : > { %3668 = vmatprep.subr.bf16.mxu1 %v4122_v7  ;;  %s4880_s29 = scalar_lea.hbm %s4973_s13, %s3312_s8 }
  0xcc   : > { %3670 = vmatpush3.bf16.msra.mxu1 %v3669_v18  ;;  %v3235_v18 = vld [vmem:[%s4927_s2 + $0x2] ss:$0 sm:$0xff] }
  0xcd   : > { %3447 = vmatprep.subr.mxu1 %v4124_v13 }
 0x14b   : > { %v566_v19 = vpop.xlane.xlu0 %565 }
 0x14c   : > { %v568_v20 = vmul.f32 0.03125, %v566_v19 }
 0x14e   : > { %v574_v22 = vmul.f32 %v568_v20, %v568_v20  ;;  %v577_v27 = vsub.f32 %v4446_v0, %v568_v20 }
 0x14f   : > { %v572_v21 = vpop.xlane.xlu0 %571 }
 0x150   : > { %v573_v23 = vmul.f32 0.03125, %v572_v21 }
 0x152   : > { %v575_v24 = vsub.f32 %v573_v23, %v574_v22 }
 0x154   : > { %v576_v25 = vmax.f32 %v575_v24, 0.0 }
 0x156   : > { %v578_v26 = vadd.f32 1e-05, %v576_v25 }
 0x158   : > { %3843 = vrsqrt.f32 %v578_v26  ;;  %v1117_v26 = vld [vmem:[%s4931_s6] sm:$0xff] }
 0x162   : > { %v3844_v28 = vpop.eup %3843 }
 0x163   : > { %v580_v30 = vmul.f32 %v3844_v28, %v577_v27  ;;  %v1119_v28 = vld [vmem:[%s4931_s6 + $0x10] sm:$0xff] }
 0x165   : > { %v585_v32 = vmul.f32 %v3226_v29, %v580_v30  ;;  %v1120_v29 = vld [vmem:[%s4931_s6 + $0x18] sm:$0xff] }
 0x166   : > { %v3681_v30 = vpack.c.bf16 %v1120_v29, %v1119_v28  ;;  %v3246_v28 = vld [vmem:[%s4927_s2 + $0x5] ss:$0 sm:$0xff] }
 0x167   : > { %v590_v33 = vadd.f32 %v3227_v31, %v585_v32 }
 0x169   : > { %3440 = vmatmul.mubr.msk.f32.vlgmr.msra.gmra.mrb[2].mxu1 %vm488_vm0, %v590_v33 }
 0x16a   : > { %3449 = vmatprep.mubr.msk.f32.mxu1 %vm4123_vm1, %v4124_v13 }
 0x19a   : > { %v4490_v34 = vpop.f32.mrb[0].mxu1 }
 0x19b   : > { %v3430_v35 = vpop.f32.mrb[1].mxu1 }
 0x23c   : > { %v664_v36 = vpop.f32.mrb[2].mxu1 }
 0x23d   : > { %839 = vrot.lane.b32.xlu0 %v664_v36, %s4125_s12  ;;  %673 = vrot.lane.b32.xlu1 %v664_v36, %s4126_s25  ;;  %v3441_v37 = vpop.f32.mrb[3].mxu1 }
 0x241   : > { %841 = vrot.lane.b32.xlu1 %v664_v36, %s4127_s27 }
 0x2af   : > { %v674_v38 = vpop.permute.xlu1 %673  ;;  %v840_v40 = vpop.permute.xlu0 %839 }
 0x2b0   : > { %3443 = vmatpush3.xpose.msk.msra.mxu0 %vm675_vm2, %v674_v38 }
 0x2b1   : > { %3452 = vmatprep.subr.mxu0 %v4124_v13 }
 0x2b3   : > { %3445 = vmatmul.mubr.msk.f32.vlgmr.msra.gmra.mrb[0].mxu0 %vm675_vm2, %v664_v36  ;;  %v842_v39 = vpop.permute.xlu1 %841 }
 0x2b4   : > { %3453 = vmatpush3.xpose.msk.msra.mxu0 %vm675_vm2, %v842_v39  ;;  %3454 = vmatprep.mubr.msk.f32.mxu0 %vm4123_vm1, %v4124_v13 }
 0x2b5   : > { %3671 = vmatprep.subr.bf16.mxu0 %v4122_v7 }
 0x2b7   : > { %3455 = vmatmul.mubr.msk.f32.vlgmr.msra.gmra.mrb[2].mxu0 %vm675_vm2, %v840_v40 }
 0x2b8   : > { %3470 = vmatprep.mubr.msk.f32.mxu0 %vm4123_vm1, %v4124_v13  ;;  %3673 = vmatpush3.bf16.msra.mxu0 %v3672_v8 }
 0x2b9   : > { %3674 = vmatprep.subr.bf16.mxu0 %v4122_v7 }
 0x2bc   : > { %3676 = vmatpush3.bf16.msra.mxu0 %v3675_v10 }
 0x2bd   : > { %3484 = vmatprep.subr.mxu0 %v4124_v13 }
 0x386   : > { %v746_v41 = vpop.f32.mrb[0].mxu0 }
 0x387   : > { %v750_v42 = vmul.f32 0.25, %v746_v41  ;;  %v3446_v43 = vpop.f32.mrb[1].mxu0 }
 0x389   : > { %v752_v44 = vsel %vm751_vm3, %v750_v42, -inf }
 0x38a   : > { %753 = vmax.xlane.f32.xlu1 %v752_v44  ;;  %v913_v45 = vpop.f32.mrb[2].mxu0  ;;  %v3238_v44 = vld [vmem:[%s4927_s2 + $0x4] ss:$0 sm:$0xff] }
 0x38b   : > { %v917_v46 = vmul.f32 0.25, %v913_v45  ;;  %v3456_v47 = vpop.f32.mrb[3].mxu0 }
 0x38d   : > { %v918_v48 = vsel %vm751_vm3, %v917_v46, -inf }
 0x38e   : > { %919 = vmax.xlane.f32.xlu0 %v918_v48 }
 0x3a4   : > { %929 = vrot.lane.b32.xlu0 %v664_v36, %s4128_s28 }
 0x417   : > { %v754_v49 = vpop.xlane.xlu1 %753 }
 0x418   : > { %v755_v50 = vsub.f32 %v750_v42, %v754_v49  ;;  %v3237_v42 = vld [vmem:[%s4927_s2 + $0x3] ss:$0 sm:$0xff] }
 0x41a   : > { %v756_v51 = vmul.f32 1.442695, %v755_v50 }
 0x41b   : > { %v920_v52 = vpop.xlane.xlu0 %919 }
 0x41c   : > { %3845 = vpow2.f32 %v756_v51  ;;  %v921_v53 = vsub.f32 %v917_v46, %v920_v52 }
 0x41e   : > { %v922_v54 = vmul.f32 1.442695, %v921_v53 }
 0x41f   : > { %v930_v1 = vpop.permute.xlu0 %929 }
 0x420   : > { %3847 = vpow2.f32 %v922_v54 }
 0x426   : > { %v3846_v55 = vpop.eup %3845 }
 0x427   : > { %v758_v56 = vsel %vm751_vm3, %v3846_v55, 0.0 }
 0x428   : > { %759 = vadd.xlane.f32.xlu1 %v758_v56 }
 0x42a   : > { %v3848_v57 = vpop.eup %3847 }
 0x42b   : > { %v924_v58 = vsel %vm751_vm3, %v3848_v57, 0.0 }
 0x42c   : > { %925 = vadd.xlane.f32.xlu1 %v924_v58 }
 0x43d   : > { %763 = vrot.lane.b32.xlu1 %v664_v36, %s4129_s23 }
 0x4b5   : > { %v760_v59 = vpop.xlane.xlu1 %759 }
 0x4b6   : > { %3849 = vrcp.f32 %v760_v59 }
 0x4b9   : > { %v926_v60 = vpop.xlane.xlu1 %925 }
 0x4ba   : > { %3851 = vrcp.f32 %v926_v60 }
 0x4bd   : > { %v764_v61 = vpop.permute.xlu1 %763 }
 0x4be   : > { %3448 = vmatpush3.msra.mxu1 %v764_v61 }
 0x4bf   : > { %3457 = vmatprep.subr.mxu1 %v4124_v13 }
 0x4c0   : > { %v3850_v62 = vpop.eup %3849 }
 0x4c1   : > { %v762_v63 = vmul.f32 %v3850_v62, %v3846_v55 }
 0x4c3   : > { %3450 = vmatmul.mubr.msk.f32.vlgmr.msra.gmra.mrb[4].mxu1 %vm751_vm3, %v762_v63 }
 0x4c4   : > { %v3852_v2 = vpop.eup %3851  ;;  %3458 = vmatpush3.msra.mxu1 %v930_v1  ;;  %3459 = vmatprep.mubr.msk.f32.mxu1 %vm4123_vm1, %v4124_v13 }
 0x4c5   : > { %v928_v3 = vmul.f32 %v3852_v2, %v3848_v57  ;;  %3677 = vmatprep.subr.bf16.mxu1 %v4122_v7 }
 0x4c7   : > { %3460 = vmatmul.mubr.msk.f32.vlgmr.msra.gmra.mrb[6].mxu1 %vm751_vm3, %v928_v3 }
 0x4c8   : > { %3481 = vmatprep.mubr.msk.f32.mxu1 %vm4123_vm1, %v4124_v13 }
 0x596   : > { %v835_v11 = vpop.f32.mrb[4].mxu1 }
 0x597   : > { %v3451_v12 = vpop.f32.mrb[5].mxu1 }
 0x59a   : > { %v1001_v14 = vpop.f32.mrb[6].mxu1 }
 0x59b   : > { %1006 = vrot.lane.b32.xlu1 %v1001_v14, %s4130_s14  ;;  %v3461_v15 = vpop.f32.mrb[7].mxu1 }
 0x60d   : > { %v1007_v16 = vpop.permute.xlu1 %1006 }
 0x60e   : > { %v1009_v17 = vsel %vm675_vm2, %v835_v11, %v1007_v16  ;;  %v1194_v16 = vld [vmem:[#allocation8] sm:$0xff] }
 0x60f   : > { %3471 = vmatmul.mubr.msk.f32.vlgmr.msra.gmra.mrb[4].mxu0 %vm488_vm0, %v1009_v17  ;;  %v1195_v17 = vld [vmem:[#allocation8 + $0x8] sm:$0xff] }
 0x610   : > { %3485 = vmatpush3.xpose.msk.msra.mxu0 %vm675_vm2, %v4490_v34  ;;  %3486 = vmatprep.mubr.msk.f32.mxu0 %vm4123_vm1, %v4124_v13 }
 0x611   : > { %3494 = vmatprep.subr.mxu0 %v4124_v13 }
 0x6e2   : > { %v1084_v19 = vpop.f32.mrb[4].mxu0 }
 0x6e3   : > { %v1085_v20 = vadd.f32 %v3235_v18, %v1084_v19  ;;  %v3472_v21 = vpop.f32.mrb[5].mxu0  ;;  %v1196_v18 = vld [vmem:[#allocation8 + $0x10] sm:$0xff]  ;;  %v3684_v19 = vpack.c.bf16 %v1195_v17, %v1194_v16  ;;  %v3252_v17 = vld [vmem:[%s4927_s2 + $0x8] ss:$0 sm:$0xff] }
 0x6e5   : > { %v4545_v22 = vadd.f32 %v1085_v20, %v4446_v0  ;;  %v1118_v0 = vld [vmem:[%s4931_s6 + $0x8] sm:$0xff]  ;;  %v1197_v20 = vld [vmem:[#allocation8 + $0x18] sm:$0xff] }
 0x6e6   : > { %v3678_v27 = vpack.c.bf16 %v1118_v0, %v1117_v26  ;;  %v3687_v21 = vpack.c.bf16 %v1197_v20, %v1196_v18 }
 0x6e7   : > { %v1091_v23 = vsel %vm488_vm0, %v4545_v22, 0.0  ;;  %v1095_v24 = vmul.f32 %v4545_v22, %v4545_v22 }
 0x6e8   : > { %1092 = vadd.xlane.f32.xlu1 %v1091_v23  ;;  %3679 = vmatpush3.bf16.msra.mxu1 %v3678_v27 }
 0x6e9   : > { %v1096_v25 = vsel %vm488_vm0, %v1095_v24, 0.0  ;;  %3680 = vmatprep.subr.bf16.mxu1 %v4122_v7 }
 0x6ea   : > { %1097 = vadd.xlane.f32.xlu0 %v1096_v25 }
 0x6ec   : > { %3682 = vmatpush3.bf16.msra.mxu1 %v3681_v30 }
 0x6ed   : > { %3489 = vmatprep.subr.mxu1 %v4124_v13 }
 0x6f9   : > { %1364 = vrot.lane.b32.xlu1 %v4490_v34, %s4125_s12 }
 0x775   : > { %v1093_v31 = vpop.xlane.xlu1 %1092 }
 0x776   : > { %v1094_v32 = vmul.f32 0.03125, %v1093_v31 }
 0x777   : > { %v1098_v33 = vpop.xlane.xlu0 %1097 }
 0x778   : > { %v1100_v35 = vmul.f32 %v1094_v32, %v1094_v32  ;;  %v1099_v36 = vmul.f32 0.03125, %v1098_v33  ;;  %v1103_v40 = vsub.f32 %v4545_v22, %v1094_v32 }
 0x779   : > { %v1365_v48 = vpop.permute.xlu1 %1364 }
 0x77a   : > { %v1101_v37 = vsub.f32 %v1099_v36, %v1100_v35 }
 0x77c   : > { %v1102_v38 = vmax.f32 %v1101_v37, 0.0  ;;  %v1640_v37 = vld [vmem:[#allocation10] sm:$0xff] }
 0x77e   : > { %v1104_v39 = vadd.f32 1e-05, %v1102_v38  ;;  %v1641_v38 = vld [vmem:[#allocation10 + $0x8] sm:$0xff] }
 0x780   : > { %3853 = vrsqrt.f32 %v1104_v39  ;;  %v3690_v39 = vpack.c.bf16 %v1641_v38, %v1640_v37 }
 0x78a   : > { %v3854_v41 = vpop.eup %3853 }
 0x78b   : > { %v1106_v43 = vmul.f32 %v3854_v41, %v1103_v40  ;;  %v1642_v40 = vld [vmem:[#allocation10 + $0x10] sm:$0xff]  ;;  %v1643_v41 = vld [vmem:[#allocation10 + $0x18] sm:$0xff] }
 0x78d   : > { %v1111_v45 = vmul.f32 %v3237_v42, %v1106_v43 }
 0x78f   : > { %v1116_v46 = vadd.f32 %v3238_v44, %v1111_v45 }
 0x791   : > { %3482 = vmatmul.mubr.msk.f32.vlgmr.msra.gmra.mrb[8].mxu1 %vm488_vm0, %v1116_v46 }
 0x792   : > { %3491 = vmatprep.mubr.msk.f32.mxu1 %vm4123_vm1, %v4124_v13 }
 0x864   : > { %v1190_v47 = vpop.f32.mrb[8].mxu1 }
 0x865   : > { %1362 = vrot.lane.b32.xlu0 %v1190_v47, %s4125_s12  ;;  %v3483_v49 = vpop.f32.mrb[9].mxu1  ;;  %3487 = vmatmul.mubr.msk.f32.vlgmr.msra.gmra.mrb[6].mxu0 %vm675_vm2, %v1190_v47 }
 0x866   : > { %3495 = vmatpush3.xpose.msk.msra.mxu0 %vm675_vm2, %v1365_v48  ;;  %3496 = vmatprep.mubr.msk.f32.mxu0 %vm4123_vm1, %v4124_v13 }
 0x867   : > { %3683 = vmatprep.subr.bf16.mxu0 %v4122_v7 }
 0x8d7   : > { %v1363_v50 = vpop.permute.xlu0 %1362 }
 0x8d8   : > { %3497 = vmatmul.mubr.msk.f32.vlgmr.msra.gmra.mrb[8].mxu0 %vm675_vm2, %v1363_v50 }
 0x8d9   : > { %3512 = vmatprep.mubr.msk.f32.mxu0 %vm4123_vm1, %v4124_v13  ;;  %3685 = vmatpush3.bf16.msra.mxu0 %v3684_v19 }
 0x8da   : > { %3686 = vmatprep.subr.bf16.mxu0 %v4122_v7 }
 0x8dd   : > { %3688 = vmatpush3.bf16.msra.mxu0 %v3687_v21 }
 0x8de   : > { %3695 = vmatprep.subr.bf16.mxu0 %v4122_v7 }
 0x938   : > { %v1270_v51 = vpop.f32.mrb[6].mxu0 }
 0x939   : > { %v1274_v52 = vmul.f32 0.25, %v1270_v51  ;;  %v3488_v53 = vpop.f32.mrb[7].mxu0 }
 0x93b   : > { %v1275_v54 = vsel %vm751_vm3, %v1274_v52, -inf }
 0x93c   : > { %1276 = vmax.xlane.f32.xlu1 %v1275_v54  ;;  %v3249_v54 = vld [vmem:[%s4927_s2 + $0x7] ss:$0 sm:$0xff] }
 0x9ab   : > { %v1436_v55 = vpop.f32.mrb[8].mxu0 }
 0x9ac   : > { %v1440_v56 = vmul.f32 0.25, %v1436_v55  ;;  %v3498_v57 = vpop.f32.mrb[9].mxu0 }
 0x9ad   : > { %v1727_v57 = vld [vmem:[%s4971_s3] sm:$0xff] }
 0x9ae   : > { %v1441_v58 = vsel %vm751_vm3, %v1440_v56, -inf }
 0x9af   : > { %1442 = vmax.xlane.f32.xlu0 %v1441_v58  ;;  %v1728_v58 = vld [vmem:[%s4971_s3 + $0x8] sm:$0xff] }
 0x9c5   : > { %1286 = vrot.lane.b32.xlu0 %v4490_v34, %s4126_s25 }
 0x9c9   : > { %v1277_v59 = vpop.xlane.xlu1 %1276 }
 0x9ca   : > { %v1278_v60 = vsub.f32 %v1274_v52, %v1277_v59  ;;  %v3248_v52 = vld [vmem:[%s4927_s2 + $0x6] ss:$0 sm:$0xff]  ;;  %v3696_v59 = vpack.c.bf16 %v1728_v58, %v1727_v57 }
 0x9cc   : > { %v1279_v61 = vmul.f32 1.442695, %v1278_v60  ;;  %v1729_v60 = vld [vmem:[%s4971_s3 + $0x10] sm:$0xff] }
 0x9ce   : > { %3855 = vpow2.f32 %v1279_v61  ;;  %v1730_v61 = vld [vmem:[%s4971_s3 + $0x18] sm:$0xff] }
 0x9d8   : > { %v3856_v62 = vpop.eup %3855 }
 0x9d9   : > { %v1281_v63 = vsel %vm751_vm3, %v3856_v62, 0.0 }
 0x9da   : > { %1282 = vadd.xlane.f32.xlu1 %v1281_v63  ;;  %v1731_v63 = vld [vmem:[%s4971_s3 + $0x20] sm:$0xff] }
 0xa3c   : > { %v1443_v1 = vpop.xlane.xlu0 %1442 }
 0xa3d   : > { %v1444_v2 = vsub.f32 %v1440_v56, %v1443_v1  ;;  %v1732_v1 = vld [vmem:[%s4971_s3 + $0x28] sm:$0xff] }
 0xa3f   : > { %v1445_v3 = vmul.f32 1.442695, %v1444_v2  ;;  %v3702_v2 = vpack.c.bf16 %v1732_v1, %v1731_v63 }
 0xa40   : > { %v1287_v4 = vpop.permute.xlu0 %1286 }
 0xa41   : > { %3857 = vpow2.f32 %v1445_v3  ;;  %3490 = vmatpush3.msra.mxu1 %v1287_v4  ;;  %v1733_v3 = vld [vmem:[%s4971_s3 + $0x30] sm:$0xff]  ;;  %v1734_v4 = vld [vmem:[%s4971_s3 + $0x38] sm:$0xff] }
 0xa42   : > { %3499 = vmatprep.subr.mxu1 %v4124_v13 }
 0xa4b   : > { %v3858_v5 = vpop.eup %3857 }
 0xa4c   : > { %v1447_v6 = vsel %vm751_vm3, %v3858_v5, 0.0 }
 0xa4d   : > { %1448 = vadd.xlane.f32.xlu1 %v1447_v6  ;;  %v3250_v6 = vld [vmem:[%s4972_s10] ss:$0 sm:$0xff] }
 0xa5e   : > { %1452 = vrot.lane.b32.xlu1 %v4490_v34, %s4127_s27 }
 0xa67   : > { %v1283_v8 = vpop.xlane.xlu1 %1282 }
 0xa68   : > { %3859 = vrcp.f32 %v1283_v8 }
 0xa72   : > { %v3860_v9 = vpop.eup %3859 }
 0xa73   : > { %v1285_v10 = vmul.f32 %v3860_v9, %v3856_v62  ;;  %v3699_v62 = vpack.c.bf16 %v1730_v61, %v1729_v60 }
 0xa75   : > { %3492 = vmatmul.mubr.msk.f32.vlgmr.msra.gmra.mrb[10].mxu1 %vm751_vm3, %v1285_v10 }
 0xa76   : > { %3501 = vmatprep.mubr.msk.f32.mxu1 %vm4123_vm1, %v4124_v13 }
 0xada   : > { %v1449_v11 = vpop.xlane.xlu1 %1448 }
 0xadb   : > { %3861 = vrcp.f32 %v1449_v11 }
 0xade   : > { %v1453_v12 = vpop.permute.xlu1 %1452 }
 0xadf   : > { %3500 = vmatpush3.msra.mxu1 %v1453_v12 }
 0xae0   : > { %3689 = vmatprep.subr.bf16.mxu1 %v4122_v7 }
 0xae5   : > { %v3862_v14 = vpop.eup %3861 }
 0xae6   : > { %v1451_v15 = vmul.f32 %v3862_v14, %v3858_v5  ;;  %v3705_v5 = vpack.c.bf16 %v1734_v4, %v1733_v3 }
 0xae8   : > { %3502 = vmatmul.mubr.msk.f32.vlgmr.msra.gmra.mrb[12].mxu1 %vm751_vm3, %v1451_v15 }
 0xae9   : > { %3523 = vmatprep.mubr.msk.f32.mxu1 %vm4123_vm1, %v4124_v13  ;;  %3691 = vmatpush3.bf16.msra.mxu1 %v3690_v39 }
 0xaea   : > { %3692 = vmatprep.subr.bf16.mxu1 %v4122_v7 }
 0xb48   : > { %v1358_v23 = vpop.f32.mrb[10].mxu1 }
 0xb49   : > { %v3493_v24 = vpop.f32.mrb[11].mxu1 }
 0xbbb   : > { %v1524_v25 = vpop.f32.mrb[12].mxu1 }
 0xbbc   : > { %1529 = vrot.lane.b32.xlu1 %v1524_v25, %s4130_s14  ;;  %v3503_v26 = vpop.f32.mrb[13].mxu1 }
 0xbbd   : > { %v3258_v26 = vld [vmem:[%s4929_s4 + $0x20] sm:$0xff] }
 0xc2e   : > { %v1530_v0 = vpop.permute.xlu1 %1529 }
 0xc2f   : > { %v1532_v27 = vsel %vm675_vm2, %v1358_v23, %v1530_v0  ;;  %v3259_v0 = vld [vmem:[%s4929_s4 + $0x28] sm:$0xff] }
 0xc30   : > { %3513 = vmatmul.mubr.msk.f32.vlgmr.msra.gmra.mrb[10].mxu0 %vm488_vm0, %v1532_v27  ;;  %v3708_v27 = vpack.c.bf16 %v3259_v0, %v3258_v26 }
 0xc31   : > { %3542 = vmatprep.mubr.msk.f32.mxu0 %vm4123_vm1, %v4124_v13  ;;  %3697 = vmatpush3.bf16.msra.mxu0 %v3696_v59 }
 0xc32   : > { %3698 = vmatprep.subr.bf16.mxu0 %v4122_v7 }
 0xc35   : > { %3700 = vmatpush3.bf16.msra.mxu0 %v3699_v62 }
 0xc36   : > { %3701 = vmatprep.subr.bf16.mxu0 %v4122_v7 }
 0xc39   : > { %3703 = vmatpush3.bf16.msra.mxu0 %v3702_v2 }
 0xc3a   : > { %3704 = vmatprep.subr.bf16.mxu0 %v4122_v7 }
 0xc3d   : > { %3706 = vmatpush3.bf16.msra.mxu0 %v3705_v5 }
 0xc3e   : > { %3566 = vmatprep.subr.mxu0 %v4124_v13 }
 0xd03   : > { %v1607_v29 = vpop.f32.mrb[10].mxu0 }
 0xd04   : > { %v1608_v30 = vadd.f32 %v3246_v28, %v1607_v29  ;;  %v3514_v31 = vpop.f32.mrb[11].mxu0  ;;  %v3260_v28 = vld [vmem:[%s4929_s4 + $0x30] sm:$0xff]  ;;  %v3261_v29 = vld [vmem:[%s4929_s4 + $0x38] sm:$0xff] }
 0xd06   : > { %v4614_v32 = vadd.f32 %v1608_v30, %v4545_v22  ;;  %v3693_v22 = vpack.c.bf16 %v1643_v41, %v1642_v40  ;;  %v3711_v30 = vpack.c.bf16 %v3261_v29, %v3260_v28  ;;  %v3274_v29 = vld [vmem:[%s4927_s2 + $0x12] ss:$0 sm:$0xff] }
 0xd08   : > { %v1614_v33 = vsel %vm488_vm0, %v4614_v32, 0.0  ;;  %v1618_v35 = vmul.f32 %v4614_v32, %v4614_v32  ;;  %3694 = vmatpush3.bf16.msra.mxu1 %v3693_v22  ;;  %v3256_v22 = vld [vmem:[%s4927_s2 + $0x10] ss:$0 sm:$0xff] }
 0xd09   : > { %1615 = vadd.xlane.f32.xlu0 %v1614_v33  ;;  %3707 = vmatprep.subr.bf16.mxu1 %v4122_v7 }
 0xd0a   : > { %v1619_v36 = vsel %vm488_vm0, %v1618_v35, 0.0 }
 0xd0b   : > { %1620 = vadd.xlane.f32.xlu1 %v1619_v36 }
 0xd96   : > { %v1616_v42 = vpop.xlane.xlu0 %1615 }
 0xd97   : > { %v1617_v43 = vmul.f32 0.03125, %v1616_v42 }
 0xd98   : > { %v1621_v44 = vpop.xlane.xlu1 %1620 }
 0xd99   : > { %v1623_v45 = vmul.f32 %v1617_v43, %v1617_v43  ;;  %v1622_v46 = vmul.f32 0.03125, %v1621_v44  ;;  %v1626_v50 = vsub.f32 %v4614_v32, %v1617_v43  ;;  %v3257_v43 = vld [vmem:[%s4927_s2 + $0x11] ss:$0 sm:$0xff] }
 0xd9b   : > { %v1624_v47 = vsub.f32 %v1622_v46, %v1623_v45 }
 0xd9d   : > { %v1625_v48 = vmax.f32 %v1624_v47, 0.0 }
 0xd9f   : > { %v1627_v49 = vadd.f32 1e-05, %v1625_v48 }
 0xda1   : > { %3863 = vrsqrt.f32 %v1627_v49 }
 0xdab   : > { %v3864_v51 = vpop.eup %3863 }
 0xdac   : > { %v1629_v53 = vmul.f32 %v3864_v51, %v1626_v50 }
 0xdae   : > { %v1634_v55 = vmul.f32 %v3248_v52, %v1629_v53 }
 0xdb0   : > { %v1639_v56 = vadd.f32 %v3249_v54, %v1634_v55 }
 0xdb2   : > { %3524 = vmatmul.mubr.msk.f32.vlgmr.msra.gmra.mrb[14].mxu1 %vm488_vm0, %v1639_v56 }
 0xdb3   : > { %3553 = vmatprep.mubr.msk.f32.mxu1 %vm4123_vm1, %v4124_v13  ;;  %3709 = vmatpush3.bf16.msra.mxu1 %v3708_v27 }
 0xdb4   : > { %3710 = vmatprep.subr.bf16.mxu1 %v4122_v7 }
 0xdb7   : > { %3712 = vmatpush3.bf16.msra.mxu1 %v3711_v30 }
 0xdb8   : > { %3556 = vmatprep.subr.mxu1 %v4124_v13 }
 0xe85   : > { %v1718_v8 = vpop.f32.mrb[14].mxu1 }
 0xe86   : > { %v1719_v9 = vadd.f32 %v3250_v6, %v1718_v8  ;;  %v3525_v10 = vpop.f32.mrb[15].mxu1 }
 0xe88   : > { %v1723_v11 = vmul.f32 0.70710677, %v1719_v9  ;;  %v1722_v14 = vmul.f32 0.5, %v1719_v9 }
 0xe8a   : > { %3865 = verf.f32 %v1723_v11 }
 0xe94   : > { %v3866_v12 = vpop.eup %3865 }
 0xe95   : > { %v1725_v15 = vadd.f32 1.0, %v3866_v12 }
 0xe97   : > { %v1726_v16 = vmul.f32 %v1725_v15, %v1722_v14 }
 0xe99   : > { %3543 = vmatmul.mubr.msk.f32.vlgmr.msra.gmra.mrb[12].mxu0 %vm1740_vm4, %v1726_v16  ;;  %v3263_v16 = vld [vmem:[%s4930_s5 + $0x20] sm:$0xff] }
 0xe9a   : > { %3568 = vmatprep.mubr.msk.f32.mxu0 %vm4123_vm1, %v4124_v13 }
 0xf6c   : > { %v1810_v18 = vpop.f32.mrb[12].mxu0 }
 0xf6d   : > { %v1811_v19 = vadd.f32 %v3252_v17, %v1810_v18  ;;  %v3544_v20 = vpop.f32.mrb[13].mxu0  ;;  %v3264_v17 = vld [vmem:[%s4930_s5 + $0x28] sm:$0xff]  ;;  %v3265_v18 = vld [vmem:[%s4930_s5 + $0x30] sm:$0xff] }
 0xf6e   : > { %v3266_v20 = vld [vmem:[%s4930_s5 + $0x38] sm:$0xff] }
 0xf6f   : > { %v4671_v21 = vadd.f32 %v1811_v19, %v4614_v32  ;;  %v3714_v19 = vpack.c.bf16 %v3264_v17, %v3263_v16 }
 0xf71   : > { %v1818_v23 = vsel %vm488_vm0, %v4671_v21, 0.0  ;;  %v1822_v24 = vmul.f32 %v4671_v21, %v4671_v21 }
 0xf72   : > { %1819 = vadd.xlane.f32.xlu0 %v1818_v23  ;;  %v3717_v23 = vpack.c.bf16 %v3266_v20, %v3265_v18 }
 0xf73   : > { %v1823_v25 = vsel %vm488_vm0, %v1822_v24, 0.0 }
 0xf76   : > { %1824 = vadd.xlane.f32.xlu0 %v1823_v25 }
 0xfff   : > { %v1820_v31 = vpop.xlane.xlu0 %1819 }
0x1000   : > { %v1821_v32 = vmul.f32 0.03125, %v1820_v31 }
0x1002   : > { %v1827_v35 = vmul.f32 %v1821_v32, %v1821_v32  ;;  %v1830_v40 = vsub.f32 %v4671_v21, %v1821_v32 }
0x1003   : > { %v1825_v33 = vpop.xlane.xlu0 %1824 }
0x1004   : > { %v1826_v36 = vmul.f32 0.03125, %v1825_v33 }
0x1006   : > { %v1828_v37 = vsub.f32 %v1826_v36, %v1827_v35 }
0x1008   : > { %v1829_v38 = vmax.f32 %v1828_v37, 0.0 }
0x100a   : > { %v1831_v39 = vadd.f32 1e-05, %v1829_v38  ;;  %v3281_v38 = vld [vmem:[%s4931_s6 + $0x28] sm:$0xff] }
0x100c   : > { %3867 = vrsqrt.f32 %v1831_v39 }
0x1016   : > { %v3868_v41 = vpop.eup %3867 }
0x1017   : > { %v1833_v42 = vmul.f32 %v3868_v41, %v1830_v40  ;;  %v3282_v40 = vld [vmem:[%s4931_s6 + $0x30] sm:$0xff]  ;;  %v3283_v41 = vld [vmem:[%s4931_s6 + $0x38] sm:$0xff] }
0x1019   : > { %v1838_v44 = vmul.f32 %v3256_v22, %v1833_v42  ;;  %v3723_v22 = vpack.c.bf16 %v3283_v41, %v3282_v40  ;;  %v3292_v40 = vld [vmem:[%s4927_s2 + $0x15] ss:$0 sm:$0xff] }
0x101b   : > { %v1843_v45 = vadd.f32 %v3257_v43, %v1838_v44 }
0x101d   : > { %3554 = vmatmul.mubr.msk.f32.vlgmr.msra.gmra.mrb[16].mxu1 %vm488_vm0, %v1843_v45 }
0x101e   : > { %3558 = vmatprep.mubr.msk.f32.mxu1 %vm4123_vm1, %v4124_v13 }
0x10f0   : > { %v1918_v46 = vpop.f32.mrb[16].mxu1 }
0x10f1   : > { %2094 = vrot.lane.b32.xlu0 %v1918_v46, %s4127_s27  ;;  %1928 = vrot.lane.b32.xlu1 %v1918_v46, %s4126_s25  ;;  %v3555_v47 = vpop.f32.mrb[17].mxu1 }
0x10f5   : > { %2092 = vrot.lane.b32.xlu1 %v1918_v46, %s4125_s12 }
0x1163   : > { %v2095_v48 = vpop.permute.xlu0 %2094  ;;  %v1929_v49 = vpop.permute.xlu1 %1928 }
0x1164   : > { %3557 = vmatpush3.xpose.msk.msra.mxu1 %vm675_vm2, %v1929_v49  ;;  %3567 = vmatpush3.xpose.msk.msra.mxu0 %vm675_vm2, %v2095_v48 }
0x1165   : > { %3561 = vmatprep.subr.mxu1 %v4124_v13  ;;  %3713 = vmatprep.subr.bf16.mxu0 %v4122_v7 }
0x1167   : > { %3559 = vmatmul.mubr.msk.f32.vlgmr.msra.gmra.mrb[18].mxu1 %vm675_vm2, %v1918_v46  ;;  %v2093_v50 = vpop.permute.xlu1 %2092 }
0x1168   : > { %3569 = vmatmul.mubr.msk.f32.vlgmr.msra.gmra.mrb[14].mxu0 %vm675_vm2, %v2093_v50  ;;  %3563 = vmatprep.mubr.msk.f32.mxu1 %vm4123_vm1, %v4124_v13 }
0x1169   : > { %3584 = vmatprep.mubr.msk.f32.mxu0 %vm4123_vm1, %v4124_v13  ;;  %3715 = vmatpush3.bf16.msra.mxu0 %v3714_v19 }
0x116a   : > { %3716 = vmatprep.subr.bf16.mxu0 %v4122_v7 }
0x116d   : > { %3718 = vmatpush3.bf16.msra.mxu0 %v3717_v23 }
0x116e   : > { %3598 = vmatprep.subr.mxu0 %v4124_v13 }
0x123a   : > { %v2000_v51 = vpop.f32.mrb[18].mxu1 }
0x123b   : > { %v2004_v52 = vmul.f32 0.25, %v2000_v51  ;;  %v3560_v53 = vpop.f32.mrb[19].mxu1  ;;  %v2166_v54 = vpop.f32.mrb[14].mxu0 }
0x123c   : > { %v2170_v55 = vmul.f32 0.25, %v2166_v54  ;;  %v3570_v56 = vpop.f32.mrb[15].mxu0  ;;  %v3278_v53 = vld [vmem:[%s4927_s2 + $0x13] ss:$0 sm:$0xff] }
0x123d   : > { %v2005_v57 = vsel %vm751_vm3, %v2004_v52, -inf }
0x123e   : > { %2006 = vmax.xlane.f32.xlu1 %v2005_v57  ;;  %v2171_v58 = vsel %vm751_vm3, %v2170_v55, -inf }
0x123f   : > { %2172 = vmax.xlane.f32.xlu0 %v2171_v58 }
0x12cb   : > { %v2007_v59 = vpop.xlane.xlu1 %2006 }
0x12cc   : > { %v2008_v60 = vsub.f32 %v2004_v52, %v2007_v59  ;;  %v2173_v61 = vpop.xlane.xlu0 %2172 }
0x12cd   : > { %v2174_v62 = vsub.f32 %v2170_v55, %v2173_v61  ;;  %v3279_v55 = vld [vmem:[%s4927_s2 + $0x14] ss:$0 sm:$0xff] }
0x12ce   : > { %v2009_v63 = vmul.f32 1.442695, %v2008_v60 }
0x12cf   : > { %v2175_v1 = vmul.f32 1.442695, %v2174_v62 }
0x12d0   : > { %3869 = vpow2.f32 %v2009_v63 }
0x12d1   : > { %3871 = vpow2.f32 %v2175_v1 }
0x12da   : > { %v3870_v2 = vpop.eup %3869 }
0x12db   : > { %v3872_v3 = vpop.eup %3871  ;;  %v2011_v4 = vsel %vm751_vm3, %v3870_v2, 0.0 }
0x12dc   : > { %2012 = vadd.xlane.f32.xlu0 %v2011_v4  ;;  %v2177_v5 = vsel %vm751_vm3, %v3872_v3, 0.0 }
0x12dd   : > { %2178 = vadd.xlane.f32.xlu1 %v2177_v5 }
0x12ee   : > { %2182 = vrot.lane.b32.xlu1 %v1918_v46, %s4128_s28 }
0x12f2   : > { %2016 = vrot.lane.b32.xlu0 %v1918_v46, %s4129_s23 }
0x1369   : > { %v2013_v6 = vpop.xlane.xlu0 %2012 }
0x136a   : > { %3873 = vrcp.f32 %v2013_v6  ;;  %v2179_v8 = vpop.xlane.xlu1 %2178 }
0x136b   : > { %3875 = vrcp.f32 %v2179_v8 }
0x136d   : > { %v2017_v9 = vpop.permute.xlu0 %2016 }
0x136e   : > { %3562 = vmatpush3.msra.mxu1 %v2017_v9  ;;  %v2183_v14 = vpop.permute.xlu1 %2182 }
0x136f   : > { %3571 = vmatprep.subr.mxu1 %v4124_v13 }
0x1374   : > { %v3874_v10 = vpop.eup %3873 }
0x1375   : > { %v2015_v11 = vmul.f32 %v3874_v10, %v3870_v2  ;;  %v3876_v12 = vpop.eup %3875 }
0x1376   : > { %v2181_v15 = vmul.f32 %v3876_v12, %v3872_v3 }
0x1377   : > { %3564 = vmatmul.mubr.msk.f32.vlgmr.msra.gmra.mrb[20].mxu1 %vm751_vm3, %v2015_v11 }
0x1378   : > { %3572 = vmatpush3.msra.mxu1 %v2183_v14  ;;  %3573 = vmatprep.mubr.msk.f32.mxu1 %vm4123_vm1, %v4124_v13 }
0x1379   : > { %3719 = vmatprep.subr.bf16.mxu1 %v4122_v7 }
0x137b   : > { %3574 = vmatmul.mubr.msk.f32.vlgmr.msra.gmra.mrb[22].mxu1 %vm751_vm3, %v2181_v15 }
0x137c   : > { %3595 = vmatprep.mubr.msk.f32.mxu1 %vm4123_vm1, %v4124_v13 }
0x144a   : > { %v2088_v24 = vpop.f32.mrb[20].mxu1 }
0x144b   : > { %v3565_v25 = vpop.f32.mrb[21].mxu1 }
0x144e   : > { %v2254_v26 = vpop.f32.mrb[22].mxu1 }
0x144f   : > { %2259 = vrot.lane.b32.xlu1 %v2254_v26, %s4130_s14  ;;  %v3575_v0 = vpop.f32.mrb[23].mxu1 }
0x14c1   : > { %v2260_v27 = vpop.permute.xlu1 %2259 }
0x14c2   : > { %v2262_v28 = vsel %vm675_vm2, %v2088_v24, %v2260_v27  ;;  %v2449_v27 = vld [vmem:[#allocation8 + $0x20] sm:$0xff] }
0x14c3   : > { %3585 = vmatmul.mubr.msk.f32.vlgmr.msra.gmra.mrb[16].mxu0 %vm488_vm0, %v2262_v28  ;;  %v2450_v28 = vld [vmem:[#allocation8 + $0x28] sm:$0xff] }
0x14c4   : > { %3600 = vmatprep.mubr.msk.f32.mxu0 %vm4123_vm1, %v4124_v13 }
0x1596   : > { %v2337_v30 = vpop.f32.mrb[16].mxu0 }
0x1597   : > { %v2338_v31 = vadd.f32 %v3274_v29, %v2337_v30  ;;  %v3586_v32 = vpop.f32.mrb[17].mxu0  ;;  %v2451_v29 = vld [vmem:[#allocation8 + $0x30] sm:$0xff]  ;;  %v3726_v30 = vpack.c.bf16 %v2450_v28, %v2449_v27 }
0x1599   : > { %v4752_v33 = vadd.f32 %v2338_v31, %v4671_v21  ;;  %v3280_v21 = vld [vmem:[%s4931_s6 + $0x20] sm:$0xff]  ;;  %v2452_v31 = vld [vmem:[#allocation8 + $0x38] sm:$0xff] }
0x159a   : > { %v3720_v39 = vpack.c.bf16 %v3281_v38, %v3280_v21  ;;  %v3729_v32 = vpack.c.bf16 %v2452_v31, %v2451_v29 }
0x159b   : > { %v2344_v35 = vsel %vm488_vm0, %v4752_v33, 0.0  ;;  %v2348_v36 = vmul.f32 %v4752_v33, %v4752_v33 }
0x159c   : > { %2345 = vadd.xlane.f32.xlu0 %v2344_v35  ;;  %3721 = vmatpush3.bf16.msra.mxu1 %v3720_v39 }
0x159d   : > { %v2349_v37 = vsel %vm488_vm0, %v2348_v36, 0.0  ;;  %3722 = vmatprep.subr.bf16.mxu1 %v4122_v7 }
0x159e   : > { %2350 = vadd.xlane.f32.xlu1 %v2349_v37 }
0x15a0   : > { %3724 = vmatpush3.bf16.msra.mxu1 %v3723_v22 }
0x15a1   : > { %3603 = vmatprep.subr.mxu1 %v4124_v13 }
0x15af   : > { %2620 = vrot.lane.b32.xlu1 %v4490_v34, %s4128_s28 }
0x15b2   : > { %2453 = vrot.lane.b32.xlu0 %v4490_v34, %s4129_s23 }
0x1629   : > { %v2346_v42 = vpop.xlane.xlu0 %2345 }
0x162a   : > { %v2347_v43 = vmul.f32 0.03125, %v2346_v42 }
0x162b   : > { %v2351_v44 = vpop.xlane.xlu1 %2350 }
0x162c   : > { %v2353_v45 = vmul.f32 %v2347_v43, %v2347_v43  ;;  %v2352_v46 = vmul.f32 0.03125, %v2351_v44  ;;  %v2356_v51 = vsub.f32 %v4752_v33, %v2347_v43 }
0x162d   : > { %v2454_v47 = vpop.permute.xlu0 %2453 }
0x162e   : > { %v2354_v48 = vsub.f32 %v2352_v46, %v2353_v45  ;;  %3599 = vmatpush3.xpose.msk.msra.mxu0 %vm675_vm2, %v2454_v47  ;;  %v2898_v47 = vld [vmem:[#allocation10 + $0x28] sm:$0xff] }
0x162f   : > { %3608 = vmatprep.subr.mxu0 %v4124_v13  ;;  %v2621_v59 = vpop.permute.xlu1 %2620 }
0x1630   : > { %v2355_v49 = vmax.f32 %v2354_v48, 0.0 }
0x1632   : > { %v2357_v50 = vadd.f32 1e-05, %v2355_v49  ;;  %v2899_v49 = vld [vmem:[#allocation10 + $0x30] sm:$0xff] }
0x1634   : > { %3877 = vrsqrt.f32 %v2357_v50  ;;  %v2900_v50 = vld [vmem:[#allocation10 + $0x38] sm:$0xff] }
0x163e   : > { %v3878_v52 = vpop.eup %3877 }
0x163f   : > { %v2359_v54 = vmul.f32 %v3878_v52, %v2356_v51 }
0x1641   : > { %v2364_v56 = vmul.f32 %v3278_v53, %v2359_v54 }
0x1643   : > { %v2369_v57 = vadd.f32 %v3279_v55, %v2364_v56 }
0x1645   : > { %3596 = vmatmul.mubr.msk.f32.vlgmr.msra.gmra.mrb[24].mxu1 %vm488_vm0, %v2369_v57 }
0x1646   : > { %3605 = vmatprep.mubr.msk.f32.mxu1 %vm4123_vm1, %v4124_v13 }
0x1718   : > { %v2444_v58 = vpop.f32.mrb[24].mxu1 }
0x1719   : > { %2618 = vrot.lane.b32.xlu0 %v2444_v58, %s4125_s12  ;;  %v3597_v60 = vpop.f32.mrb[25].mxu1  ;;  %3601 = vmatmul.mubr.msk.f32.vlgmr.msra.gmra.mrb[18].mxu0 %vm675_vm2, %v2444_v58  ;;  %s4131_s12 = smov 32  }
0x171a   : > { %3609 = vmatpush3.xpose.msk.msra.mxu0 %vm675_vm2, %v2621_v59  ;;  %3610 = vmatprep.mubr.msk.f32.mxu0 %vm4123_vm1, %v4124_v13 }
0x171b   : > { %3725 = vmatprep.subr.bf16.mxu0 %v4122_v7 }
0x178b   : > { %v2619_v61 = vpop.permute.xlu0 %2618 }
0x178c   : > { %3611 = vmatmul.mubr.msk.f32.vlgmr.msra.gmra.mrb[20].mxu0 %vm675_vm2, %v2619_v61  ;;  %v3296_v61 = vld [vmem:[%s4927_s2 + $0x16] ss:$0 sm:$0xff] }
0x178d   : > { %3626 = vmatprep.mubr.msk.f32.mxu0 %vm4123_vm1, %v4124_v13  ;;  %3727 = vmatpush3.bf16.msra.mxu0 %v3726_v30 }
0x178e   : > { %3728 = vmatprep.subr.bf16.mxu0 %v4122_v7 }
0x1791   : > { %3730 = vmatpush3.bf16.msra.mxu0 %v3729_v32 }
0x1792   : > { %3737 = vmatprep.subr.bf16.mxu0 %v4122_v7 }
0x17ec   : > { %v2526_v62 = vpop.f32.mrb[18].mxu0 }
0x17ed   : > { %v2530_v63 = vmul.f32 0.25, %v2526_v62  ;;  %v3602_v1 = vpop.f32.mrb[19].mxu0 }
0x17ef   : > { %v2531_v2 = vsel %vm751_vm3, %v2530_v63, -inf }
0x17f0   : > { %2532 = vmax.xlane.f32.xlu1 %v2531_v2 }
0x185f   : > { %v2692_v3 = vpop.f32.mrb[20].mxu0 }
0x1860   : > { %v2696_v4 = vmul.f32 0.25, %v2692_v3  ;;  %v3612_v5 = vpop.f32.mrb[21].mxu0  ;;  %v3300_v3 = vld [vmem:[%s4971_s3 + $0x40] sm:$0xff] }
0x1862   : > { %v2697_v6 = vsel %vm751_vm3, %v2696_v4, -inf }
0x1863   : > { %2698 = vmax.xlane.f32.xlu0 %v2697_v6  ;;  %v3302_v6 = vld [vmem:[%s4971_s3 + $0x50] sm:$0xff] }
0x187d   : > { %v2533_v8 = vpop.xlane.xlu1 %2532 }
0x187e   : > { %v2534_v9 = vsub.f32 %v2530_v63, %v2533_v8  ;;  %v3297_v63 = vld [vmem:[%s4927_s2 + $0x17] ss:$0 sm:$0xff]  ;;  %v3303_v8 = vld [vmem:[%s4971_s3 + $0x58] sm:$0xff] }
0x1880   : > { %v2535_v10 = vmul.f32 1.442695, %v2534_v9  ;;  %v3741_v9 = vpack.c.bf16 %v3303_v8, %v3302_v6 }
0x1882   : > { %3879 = vpow2.f32 %v2535_v10  ;;  %v3304_v10 = vld [vmem:[%s4971_s3 + $0x60] sm:$0xff] }
0x188c   : > { %v3880_v11 = vpop.eup %3879 }
0x188d   : > { %v2537_v12 = vsel %vm751_vm3, %v3880_v11, 0.0 }
0x188e   : > { %2538 = vadd.xlane.f32.xlu0 %v2537_v12 }
0x18a4   : > { %2542 = vrot.lane.b32.xlu0 %v4490_v34, %s4131_s12  ;;  %s481_s12 = scalar_lea.vmem [#allocation11], %s4424_s9  ;;  %s4132_s9 = smov [#allocation11]  }
0x18a5   : > { %s3087_s25 = sshll.u32 %s481_s12, 4  ;;  %s4039_s15 = sshll.u32 %s4132_s9, 4  ;;  %s4882_s25 = int_to_ptr.vmem [resolvable:$true] %s3087_s25  ;;  %s4040_s15 = int_to_ptr.vmem [resolvable:$false] %s4039_s15 }
0x18a6   : > { %s4035_s21 = scalar_lea.vmem %s4882_s25, 128  ;;  %s4041_s22 = scalar_lea.vmem %s4040_s15, 256 }
0x18a7   : > { %p4036_p12 = scmp.ne.s32.totalorder %s4882_s25, %s4035_s21  ;;  %p4042_p0 = scmp.lt.s32.totalorder %s4882_s25, %s4040_s15 }
0x18a8   : > { %p4043_p8 = scmp.lt.s32.totalorder %s4041_s22, %s4035_s21 }
0x18a9   : > { %p4037_p2 = pnand %p4036_p12, %p4974_p1 }
0x18aa   : > { %p4044_p6 = por %p4043_p8, %p4042_p0 }
0x18ab   : > { %p4038_p4 = pneg %p4037_p2 }
0x18ad   : > { %p4045_p10 = pnand %p4044_p6, %p4038_p4 }
0x18f0   : > { %v2699_v14 = vpop.xlane.xlu0 %2698 }
0x18f1   : > { %v2700_v15 = vsub.f32 %v2696_v4, %v2699_v14  ;;  %v3301_v4 = vld [vmem:[%s4971_s3 + $0x48] sm:$0xff]  ;;  %v3306_v14 = vld [vmem:[%s4971_s3 + $0x70] sm:$0xff] }
0x18f2   : > { %v3738_v5 = vpack.c.bf16 %v3301_v4, %v3300_v3 }
0x18f3   : > { %v2701_v16 = vmul.f32 1.442695, %v2700_v15  ;;  %v3307_v15 = vld [vmem:[%s4971_s3 + $0x78] sm:$0xff] }
0x18f5   : > { %3881 = vpow2.f32 %v2701_v16  ;;  %v3747_v16 = vpack.c.bf16 %v3307_v15, %v3306_v14 }
0x18ff   : > { %v3882_v17 = vpop.eup %3881 }
0x1900   : > { %v2703_v18 = vsel %vm751_vm3, %v3882_v17, 0.0 }
0x1901   : > { %2704 = vadd.xlane.f32.xlu1 %v2703_v18 }
0x1912   : > { %2708 = vrot.lane.b32.xlu1 %v4490_v34, %s4130_s14 }
0x191b   : > { %v2539_v19 = vpop.xlane.xlu0 %2538 }
0x191c   : > { %3883 = vrcp.f32 %v2539_v19 }
0x191f   : > { %v2543_v20 = vpop.permute.xlu0 %2542 }
0x1920   : > { %3604 = vmatpush3.msra.mxu1 %v2543_v20 }
0x1921   : > { %3613 = vmatprep.subr.mxu1 %v4124_v13 }
0x1926   : > { %v3884_v23 = vpop.eup %3883 }
0x1927   : > { %v2541_v24 = vmul.f32 %v3884_v23, %v3880_v11  ;;  %v3305_v11 = vld [vmem:[%s4971_s3 + $0x68] sm:$0xff] }
0x1928   : > { %v3744_v12 = vpack.c.bf16 %v3305_v11, %v3304_v10 }
0x1929   : > { %3606 = vmatmul.mubr.msk.f32.vlgmr.msra.gmra.mrb[26].mxu1 %vm751_vm3, %v2541_v24 }
0x192a   : > { %3615 = vmatprep.mubr.msk.f32.mxu1 %vm4123_vm1, %v4124_v13 }
0x198e   : > { %v2705_v25 = vpop.xlane.xlu1 %2704 }
0x198f   : > { %3885 = vrcp.f32 %v2705_v25 }
0x1992   : > { %v2709_v26 = vpop.permute.xlu1 %2708 }
0x1993   : > { %3614 = vmatpush3.msra.mxu1 %v2709_v26 }
0x1994   : > { %3731 = vmatprep.subr.bf16.mxu1 %v4122_v7 }
0x1999   : > { %v3886_v34 = vpop.eup %3885 }
0x199a   : > { %v2707_v0 = vmul.f32 %v3886_v34, %v3882_v17  ;;  %v3298_v17 = vld [vmem:[%s4972_s10 + $0x1] ss:$0 sm:$0xff]  ;;  %v3309_v34 = vld [vmem:[%s4927_s2 + $0x18] ss:$0 sm:$0xff] }
0x199c   : > { %3616 = vmatmul.mubr.msk.f32.vlgmr.msra.gmra.mrb[28].mxu1 %vm751_vm3, %v2707_v0 }
0x199d   : > { %3637 = vmatprep.mubr.msk.f32.mxu1 %vm4123_vm1, %v4124_v13 }
0x19fc   : > { %v2614_v35 = vpop.f32.mrb[26].mxu1 }
0x19fd   : > { %v3607_v36 = vpop.f32.mrb[27].mxu1 }
0x1a6f   : > { %v2780_v37 = vpop.f32.mrb[28].mxu1 }
0x1a70   : > { %2785 = vrot.lane.b32.xlu1 %v2780_v37, %s4130_s14  ;;  %v3617_v21 = vpop.f32.mrb[29].mxu1 }
0x1ae2   : > { %v2786_v38 = vpop.permute.xlu1 %2785 }
0x1ae3   : > { %v2788_v39 = vsel %vm675_vm2, %v2614_v35, %v2786_v38 }
0x1ae4   : > { %3627 = vmatmul.mubr.msk.f32.vlgmr.msra.gmra.mrb[22].mxu0 %vm488_vm0, %v2788_v39 }
0x1ae5   : > { %3656 = vmatprep.mubr.msk.f32.mxu0 %vm4123_vm1, %v4124_v13  ;;  %v2897_v13 = vld [vmem:[#allocation10 + $0x20] sm:$0xff]  ;;  %3739 = vmatpush3.bf16.msra.mxu0 %v3738_v5 }
0x1ae6   : > { %v3732_v48 = vpack.c.bf16 %v2898_v47, %v2897_v13  ;;  %3740 = vmatprep.subr.bf16.mxu0 %v4122_v7 }
0x1ae8   : > { %3733 = vmatpush3.bf16.msra.mxu1 %v3732_v48 }
0x1ae9   : > { %3734 = vmatprep.subr.bf16.mxu1 %v4122_v7  ;;  %3742 = vmatpush3.bf16.msra.mxu0 %v3741_v9 }
0x1aea   : > { %3743 = vmatprep.subr.bf16.mxu0 %v4122_v7 }
0x1aed   : > { %3745 = vmatpush3.bf16.msra.mxu0 %v3744_v12 }
0x1aee   : > { %3746 = vmatprep.subr.bf16.mxu0 %v4122_v7 }
0x1af1   : > { %3748 = vmatpush3.bf16.msra.mxu0 %v3747_v16 }
0x1bb7   : > { %v2863_v41 = vpop.f32.mrb[22].mxu0 }
0x1bb8   : > { %v2864_v22 = vadd.f32 %v3292_v40, %v2863_v41  ;;  %v3628_v42 = vpop.f32.mrb[23].mxu0 }
0x1bba   : > { %v4824_v43 = vadd.f32 %v2864_v22, %v4752_v33  ;;  %v3735_v33 = vpack.c.bf16 %v2900_v50, %v2899_v49 }
0x1bbc   : > { %v2870_v44 = vsel %vm488_vm0, %v4824_v43, 0.0  ;;  %v2874_v45 = vmul.f32 %v4824_v43, %v4824_v43  ;;  %3736 = vmatpush3.bf16.msra.mxu1 %v3735_v33 }
0x1bbd   : > { %2871 = vadd.xlane.f32.xlu0 %v2870_v44 }
0x1bbe   : > { %v2875_v46 = vsel %vm488_vm0, %v2874_v45, 0.0 }
0x1bbf   : > { %2876 = vadd.xlane.f32.xlu1 %v2875_v46 }
0x1c4a   : > { %v2872_v51 = vpop.xlane.xlu0 %2871 }
0x1c4b   : > { %v2873_v52 = vmul.f32 0.03125, %v2872_v51 }
0x1c4c   : > { %v2877_v53 = vpop.xlane.xlu1 %2876 }
0x1c4d   : > { %v2879_v54 = vmul.f32 %v2873_v52, %v2873_v52  ;;  %v2878_v55 = vmul.f32 0.03125, %v2877_v53  ;;  %v2882_v59 = vsub.f32 %v4824_v43, %v2873_v52 }
0x1c4f   : > { %v2880_v56 = vsub.f32 %v2878_v55, %v2879_v54 }
0x1c51   : > { %v2881_v57 = vmax.f32 %v2880_v56, 0.0 }
0x1c53   : > { %v2883_v58 = vadd.f32 1e-05, %v2881_v57 }
0x1c55   : > { %3887 = vrsqrt.f32 %v2883_v58 }
0x1c5f   : > { %v3888_v60 = vpop.eup %3887 }
0x1c60   : > { %v2885_v62 = vmul.f32 %v3888_v60, %v2882_v59 }
0x1c62   : > { %v2890_v1 = vmul.f32 %v3296_v61, %v2885_v62 }
0x1c64   : > { %v2895_v2 = vadd.f32 %v3297_v63, %v2890_v1 }
0x1c66   : > { %3638 = vmatmul.mubr.msk.f32.vlgmr.msra.gmra.mrb[30].mxu1 %vm488_vm0, %v2895_v2 }
0x1d39   : > { %v2975_v18 = vpop.f32.mrb[30].mxu1 }
0x1d3a   : > { %v2976_v19 = vadd.f32 %v3298_v17, %v2975_v18  ;;  %v3639_v20 = vpop.f32.mrb[31].mxu1 }
0x1d3c   : > { %v2980_v7 = vmul.f32 0.70710677, %v2976_v19  ;;  %v2979_v24 = vmul.f32 0.5, %v2976_v19 }
0x1d3e   : > { %3889 = verf.f32 %v2980_v7 }
0x1d48   : > { %v3890_v23 = vpop.eup %3889 }
0x1d49   : > { %v2982_v25 = vadd.f32 1.0, %v3890_v23 }
0x1d4b   : > { %v2983_v26 = vmul.f32 %v2982_v25, %v2979_v24 }
0x1d4d   : > { %3657 = vmatmul.mubr.msk.f32.vlgmr.msra.gmra.mrb[24].mxu0 %vm1740_vm4, %v2983_v26 }
0x1e20   : > { %v3067_v0 = vpop.f32.mrb[24].mxu0 }
0x1e21   : > { %v3068_v27 = vadd.f32 %v3309_v34, %v3067_v0  ;;  %v3658_v28 = vpop.f32.mrb[25].mxu0 }
0x1e23   : > { %v3071_v29 = vadd.f32 %v3068_v27, %v4824_v43 }
0x1e25   : > { %3072 = vst.msk [vmem:[%s481_s12] sm:$0xff] %vm488_vm0, %v3071_v29 }
0x1e26   : > { %4048 = shalt.err (!%p4045_p10)
}
0x1e27   : > { %s4049_s7 = scalar_lea.hbm %s4880_s29, 128  ;;  %s4053_s23 = scalar_lea.hbm %s4973_s13, 256 }
0x1e28   : > { %p4050_p13 = scmp.ne.s32.totalorder %s4880_s29, %s4049_s7  ;;  %p4054_p9 = scmp.lt.u32.totalorder %s4880_s29, %s4973_s13 }
0x1e29   : > { %p4055_p3 = scmp.lt.u32.totalorder %s4053_s23, %s4049_s7  ;;  %p4057_p12 = scmp.lt.u32.totalorder %s4049_s7, %s4880_s29 }
0x1e2a   : > { %p4051_p5 = pnand %p4050_p13, %p4974_p1 }
0x1e2b   : > { %p4056_p7 = por %p4055_p3, %p4054_p9 }
0x1e2c   : > { %p4052_p11 = pneg %p4051_p5 }
0x1e2d   : > { %p4058_p2 = por %p4057_p12, %p4056_p7 }
0x1e2f   : > { %p4059_p4 = pnand %p4058_p2, %p4052_p11 }
0x1e31   : > { %4062 = shalt.err (!%p4059_p4)
}
0x1e32   : > { %3765 = dma.vmem_to_hbm [thread:$0]  (%p4974_p1), %s4882_s25, 128, %s4880_s29, %s3074_s16  }
0x1e33 PF: > { %s4975_s12 = sld [smem:[#allocation17_spill]]  ;;  %s4976_s27 = sld [smem:[#allocation18_spill]] }
0x1e34   : > { %p4978_p8 = scmp.ge.s32.totalorder %s4113_s20, 2 }
0x1e39   : > { %s3099_s14 = sand.u32 1, %s4975_s12   ;;  %p4977_p0 = scmp.ne.s32.totalorder %s4976_s27, 0 }
0x1e3a   : > { %s3100_s21 = scalar_lea.sflag [#allocation4], %s3099_s14 }
0x1e3b   : > { %p3785_p6 = pnand %p4978_p8, %p4977_p0 }
0x1e3d   : > { %4096 = dma.done.wait (!%p3785_p6), %s3100_s21, 128  }
0x1e3e   : > { %4098 = vsyncadd (!%p3785_p6), %s3100_s21, 4294967168  ;;  %p28_p10 = scmp.ge.s32.totalorder %s4333_s24, 4   ;;  %s4979_s17 = smov %s4105_s18 }
0x1e3f   : > { %s4980_s18 = smov %s4109_s19  ;;  %s4981_s19 = smov %s4343_s11 }
0x1e40   : > { %s4982_s20 = smov %s4333_s24  ;;  %30 = sbr.rel (!%p28_p10) target bundleno = 15 (0xf), region = 141 }
0x1e47   :  { %3105 = vsyncpa [#allocation3], 1 }
0x1e48   :  { %3107 = vsyncpa [#allocation3 + $0x1], 1 }
0x1e49   :  { %3108 = vsyncpa [#allocation6], 1 }
0x1e4a   :  { %3110 = vsyncpa [#allocation6 + $0x1], 1 }
0x1e4b   :  { %3111 = vsyncpa [#allocation9], 1 }
0x1e4c   :  { %3112 = vsyncpa [#allocation4], 1 }
0x1e4d   :  { %3114 = vsyncpa [#allocation4 + $0x1], 1 }

</bundles_post_ra>
